<compile_context>
chip_gen: v7x
topology: tpu7x:2x2x1
jax: 0.10.0
libtpu: 0.0.40
codegen_flags: <defaults>
</compile_context>

<pallas_src>
from functools import lru_cache

import jax
import jax.numpy as jnp
import numpy as np
from jax import lax
from jax.experimental import pallas as pl
from jax.experimental.pallas import tpu as pltpu


def _upsample_kernel(e_ref, x_ref, o_ref):
    # x_ref: (BR, Kw) packed input rows; e_ref: (Kw, Nw) 0/1 expansion matrix.
    # Each output row depends only on the same input row, so ragged edge blocks (whose
    # out-of-bounds rows hold garbage) cannot contaminate in-bounds rows.
    o_ref[...] = jnp.dot(
        x_ref[...],
        e_ref[...],
        precision=lax.Precision.HIGHEST,     # exact replication of fp32 by 0/1 weights
        preferred_element_type=jnp.float32,
    ).astype(o_ref.dtype)


def _round_up(v: int, m: int) -> int:
    return -(-v // m) * m


def _sublane(itemsize: int) -> int:
    # Sub-32-bit dtypes pack along sublanes: 8 rows (4B), 16 rows (2B), 32 rows (1B).
    return max(8, 32 // max(1, itemsize))


def _pick_group(rows: int, W: int, sf: int, itemsize: int) -> int:
    """Rows-per-packed-row g (a divisor of rows).

    Lexicographic preference:
      1. Kw within the MXU-safety cap (keeps the fp32 HIGHEST matmul below the HBM
         roofline on all generations -- the kernel must stay a memory-bound copy),
      2. lane-dense packed OUTPUT row (Nw % 128 == 0)  -- biggest store/DMA lever,
      3. lane-dense packed INPUT row  (Kw % 128 == 0)  -- unmasked vld, full MXU K dim,
      4. larger Kw (more packing per sublane row) within the cap.
    """
    soft_cap = 128 if itemsize >= 4 else (256 if itemsize == 2 else 512)
    hard_cap = 512   # keeps the one-hot matrix <= ~1 MiB
    best_key, best_g = None, 1
    for g in range(1, min(rows, max(1, hard_cap // W)) + 1):
        if rows % g:
            continue
        kw = g * W
        nw = sf * sf * kw
        key = (kw <= soft_cap, nw % 128 == 0, kw % 128 == 0, kw)
        if best_key is None or key > best_key:
            best_key, best_g = key, g
    return best_g


def _vmem_limit_bytes() -> int:
    cap = 128 << 20
    try:
        info = pltpu.get_tpu_info()
        cap = int(getattr(info, "vmem_capacity_bytes", cap) or cap)
    except Exception:
        pass
    # ~38 MiB on 64-MiB v7x, 48 MiB on 128-MiB v5e/v6e; leaves headroom for compiler
    # internal scratch.
    return min(cap * 3 // 5, 48 << 20)


def _pick_block_rows(R: int, kw: int, nw: int, itemsize: int,
                     e_bytes: int, vmem_limit: int) -> int:
    sub = _sublane(itemsize)
    if R <= sub:
        return R
    in_row = _round_up(kw, 128) * itemsize        # padded VMEM row widths
    out_row = _round_up(nw, 128) * itemsize
    per_row = in_row + out_row
    # VMEM per step: double-buffered in+out blocks + double-buffered (constant) E.
    step_budget = (vmem_limit - 2 * e_bytes) // 2 - (1 << 20)
    step_budget = min(max(step_budget, per_row * sub), 16 << 20)
    br_vmem = max(sub, step_budget // per_row)
    # Pipeline depth: target >= 8 grid steps (>= 2 per TensorCore on dual-TC v7x) while
    # keeping each output DMA >= ~1 MiB so the ~0.35us per-step overhead stays < 1%.
    br_steps = -(-R // 8)
    br_1mib = -(-(1 << 20) // (nw * itemsize))
    br = max(br_steps, br_1mib)
    br = min(br, br_vmem, R)
    br = max(sub, (br // sub) * sub)
    return R if br >= R else br


@lru_cache(maxsize=None)
def _expansion_matrix_np(W: int, sf: int, g: int) -> np.ndarray:
    """One-hot matrix mapping a packed input row (g*W) to a packed output row."""
    kw, w_out = g * W, sf * W
    nw = sf * sf * kw
    p = np.arange(nw)
    b, wo = np.divmod(p, w_out)                  # local output row / col within a group
    src = (b // sf) * W + (wo // sf)             # nearest, integer sf: src = dst // sf
    e = np.zeros((kw, nw), dtype=np.float32)
    e[src, p] = 1.0
    return e


def upsample_nearest(x: jax.Array, scale_factor: float = 2.0, mode: str = "nearest") -> jax.Array:
    """Matches F.interpolate(x, scale_factor=scale_factor, mode='nearest') for NCHW
    float inputs with an integer scale factor (YOLO uses 2.0)."""
    if mode != "nearest":
        raise NotImplementedError("Only mode='nearest' is implemented.")
    sf = int(round(float(scale_factor)))
    if sf < 1 or abs(sf - float(scale_factor)) > 1e-9:
        # TODO(synk): non-integer scale factors need PyTorch's floor(dst/scale) index
        # gather instead of pure replication; not needed for the YOLO scale=2 case.
        raise NotImplementedError("Only integer scale factors are implemented.")

    N, C, H, W = x.shape
    H_out, W_out = H * sf, W * sf
    itemsize = jnp.dtype(x.dtype).itemsize

    rows = N * C * H                   # rows of the flattened (N*C*H, W) "image"
    g = _pick_group(rows, W, sf, itemsize)
    R = rows // g                      # packed rows
    Kw = g * W                         # packed input row width
    Nw = sf * sf * Kw                  # packed output row width (contiguous in NCHW out)
    # TODO(synk): very wide W (>~512) would need a W-tiled expansion matrix; YOLO
    # feature maps are far below that.

    e = jnp.asarray(_expansion_matrix_np(W, sf, g), dtype=x.dtype)
    e_bytes = Kw * Nw * itemsize

    vmem_limit = _vmem_limit_bytes()
    br = _pick_block_rows(R, Kw, Nw, itemsize, e_bytes, vmem_limit)
    grid = (-(-R // br),)

    x2 = x.reshape(R, Kw)              # free view

    out2 = pl.pallas_call(
        _upsample_kernel,
        out_shape=jax.ShapeDtypeStruct((R, Nw), x.dtype),
        grid_spec=pltpu.PrefetchScalarGridSpec(
            num_scalar_prefetch=0,
            grid=grid,
            in_specs=[
                # Constant-index expansion matrix: fetched once, stays resident.  With
                # the Kw cap it is <= ~0.5 MiB, so default double-buffering is noise.
                pl.BlockSpec((Kw, Nw), lambda r: (0, 0)),
                pl.BlockSpec((br, Kw), lambda r: (r, 0)),   # packed input rows
            ],
            out_specs=pl.BlockSpec((br, Nw), lambda r: (r, 0)),
        ),
        compiler_params=pltpu.CompilerParams(
            dimension_semantics=("parallel",),        # split across TCs on dual-TC v7x
            vmem_limit_bytes=vmem_limit,
        ),
        cost_estimate=pl.CostEstimate(
            flops=0,                                   # it is a copy, not a matmul
            transcendentals=0,
            bytes_accessed=(1 + sf * sf) * x.size * itemsize + e_bytes,
        ),
    )(e, x2)

    return out2.reshape(N, C, H_out, W_out)


if __name__ == "__main__":
    key = jax.random.PRNGKey(0)
    x = jax.random.normal(key, (2, 4, 16, 16), dtype=jnp.float32)

    up2x = jax.jit(lambda t: upsample_nearest(t, scale_factor=2.0, mode="nearest"))
    out = jax.block_until_ready(up2x(x))

    # Reference: nearest upsample by 2 == repeat along H and W.
    ref = jnp.repeat(jnp.repeat(x, 2, axis=2), 2, axis=3)
    assert out.shape == (2, 4, 32, 32), out.shape
    np.testing.assert_allclose(np.asarray(out), np.asarray(ref), rtol=0, atol=0)

    print("KERNEL_OK")
</pallas_src>

<mosaic_0001>
module attributes {stable_mosaic.version = 11 : i64} {
  func.func @_upsample_kernel(%arg0: i32, %arg1: memref<128x512xf32, #tpu.memory_space<vmem>>, %arg2: memref<16x128xf32, #tpu.memory_space<vmem>>, %arg3: memref<16x512xf32, #tpu.memory_space<vmem>>) attributes {dimension_semantics = [#tpu.dimension_semantics<parallel>], iteration_bounds = array<i64: 1>, scalar_prefetch = 0 : i64, scratch_operands = 0 : i64, tpu.core_type = #tpu.core_type<tc>, window_params = [{pipeline_mode = #tpu.pipeline_mode<synchronous>, transform_indices = @transform_0, window_bounds = array<i64: 128, 512>}, {transform_indices = @transform_1, window_bounds = array<i64: 16, 128>}, {transform_indices = @transform_2, window_bounds = array<i64: 16, 512>}]} {
    %c0 = arith.constant 0 : index
    %c0_0 = arith.constant 0 : index
    %0 = vector.load %arg2[%c0, %c0_0] : memref<16x128xf32, #tpu.memory_space<vmem>>, vector<16x128xf32>
    %c0_1 = arith.constant 0 : index
    %c0_2 = arith.constant 0 : index
    %1 = vector.load %arg1[%c0_1, %c0_2] : memref<128x512xf32, #tpu.memory_space<vmem>>, vector<128x512xf32>
    %cst = arith.constant dense<0.000000e+00> : vector<16x512xf32>
    %2 = tpu.matmul %0, %1, %cst {dimension_numbers = #tpu.dot_dimension_numbers<[1], [0], [0], [1], [0, 0, 1, 1], [], []>, precision = #tpu.contract_precision<fp32>} : vector<16x128xf32>, vector<128x512xf32>, vector<16x512xf32> -> vector<16x512xf32>
    %c0_3 = arith.constant 0 : index
    %c0_4 = arith.constant 0 : index
    %3 = vector.load %arg3[%c0_3, %c0_4] : memref<16x512xf32, #tpu.memory_space<vmem>>, vector<16x512xf32>
    tpu.vector_store %arg3[%c0_3, %c0_4], %2 {strides = array<i32>} : memref<16x512xf32, #tpu.memory_space<vmem>>, vector<16x512xf32>,
    return
  }
  func.func @transform_0(%arg0: i32) -> (i32, i32) {
    %c0_i32 = arith.constant 0 : i32
    %c0_i32_0 = arith.constant 0 : i32
    %c0_i32_1 = arith.constant 0 : i32
    return %c0_i32, %c0_i32_0 : i32, i32
  }
  func.func @transform_1(%arg0: i32) -> (i32, i32) {
    %c0_i32 = arith.constant 0 : i32
    %c0_i32_0 = arith.constant 0 : i32
    return %arg0, %c0_i32 : i32, i32
  }
  func.func @transform_2(%arg0: i32) -> (i32, i32) {
    %c0_i32 = arith.constant 0 : i32
    %c0_i32_0 = arith.constant 0 : i32
    return %arg0, %c0_i32 : i32, i32
  }
}

</mosaic_0001>

<bundles_post_ra>
// kernel: _lambda_.1
= control target key start
LH: loop header
LB: loop body
LE: loop exit
PB: predicated region body
PF: predicated region fallthrough
CT: control target
= control target key end

     0   :  { %7 = vsyncpa [#allocation3], 0  ;;  %s2364_s9 = smov [#allocation2]   ;;  %s3309_s0 = inlined_call_operand.hbm [shape: f32[128,512], index: 0, kind: input, shape index: {}]   ;;  %s3310_s1 = inlined_call_operand.vmem [shape: f32[16,128], index: 1, kind: input, shape index: {}]   ;;  %s3311_s2 = inlined_call_operand.vmem [shape: f32[16,512], index: 2, kind: output, shape index: {}]  }
   0x1   :  { %s13_s10 = sshll.u32 %s2364_s9, 4  ;;  %s2340_s13 = scalar_lea.hbm %s3309_s0, 8192  ;;  %s14_s10 = int_to_ptr.vmem [resolvable:$true] %s13_s10 }
   0x2   :  { %p2341_p0 = scmp.ne.s32.totalorder %s3309_s0, %s2340_s13  ;;  %p2344_p1 = scmp.lt.u32.totalorder %s2340_s13, %s3309_s0 }
   0x4   :  { %p2346_p2 = pnand %p2344_p1, %p2341_p0 }
   0x6   :  { %2349 = shalt.err (!%p2346_p2)
}
   0x7   :  { %s2350_s18 = scalar_lea.vmem %s14_s10, 8192  ;;  %p2355_p4 = scmp.lt.s32.totalorder %s14_s10, %s14_s10 }
   0x8   :  { %p2351_p3 = scmp.ne.s32.totalorder %s14_s10, %s2350_s18  ;;  %p2356_p5 = scmp.lt.s32.totalorder %s2350_s18, %s2350_s18 }
   0xa   :  { %p2357_p6 = por %p2356_p5, %p2355_p4 }
   0xc   :  { %p2358_p7 = pnand %p2357_p6, %p2351_p3 }
   0xe   :  { %2361 = shalt.err (!%p2358_p7)
}
   0xf   :  { %s2365_s19 = smov 512   ;;  %s2366_s20 = smov 32  }
  0x10   :  { %19 = dma.hbm_to_vmem [thread:$0]  %s3309_s0, 8192, %s14_s10, [#allocation3], %s2365_s19, %s2365_s19, %s2366_s20  }
  0x11   :  { %2362 = dma.done.wait [#allocation3], 8192  }
  0x12   :  { %2363 = vsyncadd [#allocation3], 4294959104  ;;  %v3312_v0 = vmov 0.0   ;;  %v28_v1 = vld [vmem:[#allocation2 + $0x8] sm:$0xff]  ;;  %v30_v3 = vld [vmem:[#allocation2 + $0x18] sm:$0xff] }
  0x13   :  { %187 = vmatprep.mubr.f32.mxu0 %v3312_v0  ;;  %1091 = vmatprep.mubr.f32.mxu1 %v3312_v0  ;;  %v32_v2 = vld [vmem:[#allocation2 + $0x28] sm:$0xff]  ;;  %v91_v4 = vand.u32 4294901760, %v28_v1  ;;  %v34_v6 = vld [vmem:[#allocation2 + $0x38] sm:$0xff]  ;;  %v995_v7 = vand.u32 4294901760, %v30_v3  ;;  %v27_v8 = vld [vmem:[#allocation2] sm:$0xff] }
  0x14   :  { %v95_v5 = vand.u32 4294901760, %v32_v2  ;;  %v31_v9 = vld [vmem:[#allocation2 + $0x20] sm:$0xff]  ;;  %v999_v10 = vand.u32 4294901760, %v34_v6  ;;  %v93_v11 = vand.u32 4294901760, %v27_v8  ;;  %v29_v13 = vld [vmem:[#allocation2 + $0x10] sm:$0xff]  ;;  %v36_v15 = vld [vmem:[#allocation2 + $0x48] sm:$0xff] }
  0x15   :  { %v97_v12 = vand.u32 4294901760, %v31_v9  ;;  %v33_v14 = vld [vmem:[#allocation2 + $0x30] sm:$0xff]  ;;  %v2399_v17 = vsub.f32 %v28_v1, %v91_v4  ;;  %v2403_v19 = vsub.f32 %v30_v3, %v995_v7  ;;  %v40_v20 = vld [vmem:[#allocation2 + $0x68] sm:$0xff]  ;;  %v38_v21 = vld [vmem:[#allocation2 + $0x58] sm:$0xff]  ;;  %v997_v29 = vand.u32 4294901760, %v29_v13 }
  0x16   :  { %v2397_v16 = vpack.c.bf16 %v95_v5, %v91_v4  ;;  %v2401_v18 = vsub.f32 %v32_v2, %v95_v5  ;;  %v42_v22 = vld [vmem:[#allocation2 + $0x78] sm:$0xff]  ;;  %v2405_v23 = vpack.c.bf16 %v999_v10, %v995_v7  ;;  %v2407_v24 = vsub.f32 %v34_v6, %v999_v10  ;;  %v35_v27 = vld [vmem:[#allocation2 + $0x40] sm:$0xff]  ;;  %v37_v37 = vld [vmem:[#allocation2 + $0x50] sm:$0xff] }
  0x17   :  { %3515 = vst [vmem:[#allocation6_spill] sm:$0xff] %v2399_v17  ;;  %3517 = vst [vmem:[#allocation8_spill] sm:$0xff] %v2403_v19  ;;  %v2409_v25 = vpack.c.bf16 %v97_v12, %v93_v11  ;;  %v2411_v26 = vsub.f32 %v27_v8, %v93_v11  ;;  %v2414_v28 = vsub.f32 %v31_v9, %v97_v12  ;;  %v1001_v30 = vand.u32 4294901760, %v33_v14  ;;  %v39_v32 = vld [vmem:[#allocation2 + $0x60] sm:$0xff]  ;;  %v41_v38 = vld [vmem:[#allocation2 + $0x70] sm:$0xff] }
  0x18   :  { %3514 = vst [vmem:[#allocation5_spill] sm:$0xff] %v2397_v16  ;;  %3516 = vst [vmem:[#allocation7_spill] sm:$0xff] %v2401_v18  ;;  %1913 = vmatprep.subr.bf16.mxu0 %v2397_v16  ;;  %v99_v31 = vand.u32 4294901760, %v36_v15  ;;  %2105 = vmatprep.subr.bf16.mxu1 %v2405_v23  ;;  %v103_v33 = vand.u32 4294901760, %v40_v20  ;;  %v1003_v34 = vand.u32 4294901760, %v38_v21  ;;  %v1007_v35 = vand.u32 4294901760, %v42_v22 }
  0x19   :  { %3518 = vst [vmem:[#allocation9_spill] sm:$0xff] %v2405_v23  ;;  %3519 = vst [vmem:[#allocation10_spill] sm:$0xff] %v2407_v24  ;;  %1915 = vmatpush1.bf16.msra.mxu0 %v2409_v25  ;;  %v101_v36 = vand.u32 4294901760, %v35_v27  ;;  %v2418_v39 = vpack.c.bf16 %v1001_v30, %v997_v29  ;;  %v2420_v40 = vsub.f32 %v29_v13, %v997_v29  ;;  %v44_v43 = vld [vmem:[#allocation2 + $0x88] sm:$0xff]  ;;  %v46_v45 = vld [vmem:[#allocation2 + $0x98] sm:$0xff]  ;;  %v105_v52 = vand.u32 4294901760, %v39_v32 }
  0x1a   :  { %3520 = vst [vmem:[#allocation11_spill] sm:$0xff] %v2409_v25  ;;  %3521 = vst [vmem:[#allocation12_spill] sm:$0xff] %v2411_v26  ;;  %v2422_v41 = vsub.f32 %v33_v14, %v1001_v30  ;;  %v2424_v42 = vsub.f32 %v36_v15, %v99_v31  ;;  %v48_v44 = vld [vmem:[#allocation2 + $0xa8] sm:$0xff]  ;;  %v2426_v46 = vpack.c.bf16 %v103_v33, %v99_v31  ;;  %v50_v50 = vld [vmem:[#allocation2 + $0xb8] sm:$0xff]  ;;  %v1005_v54 = vand.u32 4294901760, %v37_v37 }
  0x1b   :  { %3522 = vst [vmem:[#allocation13_spill] sm:$0xff] %v2414_v28  ;;  %3523 = vst [vmem:[#allocation14_spill] sm:$0xff] %v2418_v39  ;;  %v2428_v47 = vsub.f32 %v40_v20, %v103_v33  ;;  %v2430_v48 = vpack.c.bf16 %v1007_v35, %v1003_v34  ;;  %v2432_v49 = vsub.f32 %v38_v21, %v1003_v34  ;;  %2107 = vmatpush1.bf16.msra.mxu1 %v2418_v39  ;;  %v43_v59 = vld [vmem:[#allocation2 + $0x80] sm:$0xff]  ;;  %v45_v2 = vld [vmem:[#allocation2 + $0x90] sm:$0xff] }
  0x1c   :  { %3524 = vst [vmem:[#allocation15_spill] sm:$0xff] %v2420_v40  ;;  %3525 = vst [vmem:[#allocation16_spill] sm:$0xff] %v2422_v41  ;;  %v2435_v51 = vsub.f32 %v42_v22, %v1007_v35  ;;  %v2437_v53 = vsub.f32 %v35_v27, %v101_v36  ;;  %1917 = vmatprep.subr.bf16.mxu0 %v2426_v46  ;;  %v1009_v55 = vand.u32 4294901760, %v41_v38  ;;  %v107_v56 = vand.u32 4294901760, %v44_v43  ;;  %v47_v60 = vld [vmem:[#allocation2 + $0xa0] sm:$0xff]  ;;  %v49_v3 = vld [vmem:[#allocation2 + $0xb0] sm:$0xff] }
  0x1d   :  { %3526 = vst [vmem:[#allocation17_spill] sm:$0xff] %v2426_v46  ;;  %3527 = vst [vmem:[#allocation18_spill] sm:$0xff] %v2430_v48  ;;  %2109 = vmatprep.subr.bf16.mxu1 %v2430_v48  ;;  %v111_v57 = vand.u32 4294901760, %v48_v44  ;;  %v1011_v58 = vand.u32 4294901760, %v46_v45  ;;  %v2441_v61 = vpack.c.bf16 %v105_v52, %v101_v36  ;;  %v2443_v62 = vsub.f32 %v39_v32, %v105_v52  ;;  %v52_v4 = vld [vmem:[#allocation2 + $0xc8] sm:$0xff]  ;;  %v54_v10 = vld [vmem:[#allocation2 + $0xd8] sm:$0xff] }
  0x1e   :  { %v2445_v63 = vsub.f32 %v37_v37, %v1005_v54  ;;  %v1015_v1 = vand.u32 4294901760, %v50_v50  ;;  %v2447_v5 = vpack.c.bf16 %v1009_v55, %v1005_v54  ;;  %v2449_v6 = vsub.f32 %v41_v38, %v1009_v55  ;;  %v56_v9 = vld [vmem:[#allocation2 + $0xe8] sm:$0xff]  ;;  %v58_v11 = vld [vmem:[#allocation2 + $0xf8] sm:$0xff]  ;;  %v51_v33 = vld [vmem:[#allocation2 + $0xc0] sm:$0xff] }
  0x1f   :  { %3528 = vst [vmem:[#allocation19_spill] sm:$0xff] %v2441_v61  ;;  %v2451_v7 = vpack.c.bf16 %v111_v57, %v107_v56  ;;  %v2453_v8 = vsub.f32 %v44_v43, %v107_v56  ;;  %1919 = vmatpush1.bf16.msra.mxu0 %v2441_v61  ;;  %v2456_v12 = vsub.f32 %v48_v44, %v111_v57  ;;  %v109_v20 = vand.u32 4294901760, %v43_v59  ;;  %v55_v38 = vld [vmem:[#allocation2 + $0xe0] sm:$0xff]  ;;  %v53_v43 = vld [vmem:[#allocation2 + $0xd0] sm:$0xff]  ;;  %v60_v55 = vld [vmem:[#allocation2 + $0x108] sm:$0xff] }
  0x20   :  { %3529 = vst [vmem:[#allocation20_spill] sm:$0xff] %v2447_v5  ;;  %v2458_v13 = vpack.c.bf16 %v1015_v1, %v1011_v58  ;;  %v2460_v14 = vsub.f32 %v46_v45, %v1011_v58  ;;  %v2462_v15 = vsub.f32 %v50_v50, %v1015_v1  ;;  %2111 = vmatpush1.bf16.msra.mxu1 %v2447_v5  ;;  %v113_v21 = vand.u32 4294901760, %v47_v60  ;;  %v57_v44 = vld [vmem:[#allocation2 + $0xf0] sm:$0xff]  ;;  %v64_v56 = vld [vmem:[#allocation2 + $0x128] sm:$0xff]  ;;  %v62_v57 = vld [vmem:[#allocation2 + $0x118] sm:$0xff] }
  0x21   :  { %3530 = vst [vmem:[#allocation21_spill] sm:$0xff] %v2451_v7  ;;  %1921 = vmatprep.subr.bf16.mxu0 %v2451_v7  ;;  %v1013_v22 = vand.u32 4294901760, %v45_v2  ;;  %v1017_v27 = vand.u32 4294901760, %v49_v3  ;;  %v115_v29 = vand.u32 4294901760, %v52_v4  ;;  %v119_v30 = vand.u32 4294901760, %v56_v9  ;;  %v63_v0 = vld [vmem:[#allocation2 + $0x120] sm:$0xff] }
  0x22   :  { %3531 = vst [vmem:[#allocation22_spill] sm:$0xff] %v2458_v13  ;;  %2113 = vmatprep.subr.bf16.mxu1 %v2458_v13  ;;  %v1019_v31 = vand.u32 4294901760, %v54_v10  ;;  %v1023_v32 = vand.u32 4294901760, %v58_v11  ;;  %v2467_v34 = vpack.c.bf16 %v113_v21, %v109_v20  ;;  %v2469_v35 = vsub.f32 %v43_v59, %v109_v20  ;;  %v72_v13 = vld [vmem:[#allocation2 + $0x168] sm:$0xff]  ;;  %v70_v48 = vld [vmem:[#allocation2 + $0x158] sm:$0xff]  ;;  %v69_v46 = vld [vmem:[#allocation2 + $0x150] sm:$0xff] }
  0x23   :  { %v2471_v36 = vsub.f32 %v47_v60, %v113_v21  ;;  %v2473_v37 = vpack.c.bf16 %v1017_v27, %v1013_v22  ;;  %v2475_v45 = vsub.f32 %v45_v2, %v1013_v22  ;;  %v2477_v50 = vsub.f32 %v49_v3, %v1017_v27  ;;  %v66_v21 = vld [vmem:[#allocation2 + $0x138] sm:$0xff]  ;;  %v73_v16 = vld [vmem:[#allocation2 + $0x170] sm:$0xff] }
  0x24   :  { %3532 = vst [vmem:[#allocation23_spill] sm:$0xff] %v2467_v34  ;;  %v2479_v52 = vpack.c.bf16 %v119_v30, %v115_v29  ;;  %v2481_v54 = vsub.f32 %v52_v4, %v115_v29  ;;  %1923 = vmatpush1.bf16.msra.mxu0 %v2467_v34  ;;  %v2485_v58 = vsub.f32 %v56_v9, %v119_v30  ;;  %v117_v1 = vand.u32 4294901760, %v51_v33  ;;  %v59_v30 = vld [vmem:[#allocation2 + $0x100] sm:$0xff]  ;;  %v68_v34 = vld [vmem:[#allocation2 + $0x148] sm:$0xff] }
  0x25   :  { %3533 = vst [vmem:[#allocation24_spill] sm:$0xff] %v2473_v37  ;;  %2115 = vmatpush1.bf16.msra.mxu1 %v2473_v37  ;;  %v2487_v59 = vpack.c.bf16 %v1023_v32, %v1019_v31  ;;  %v2489_v60 = vsub.f32 %v54_v10, %v1019_v31  ;;  %v2492_v2 = vsub.f32 %v58_v11, %v1023_v32  ;;  %v121_v3 = vand.u32 4294901760, %v55_v38  ;;  %v61_v10 = vld [vmem:[#allocation2 + $0x110] sm:$0xff] }
  0x26   :  { %3534 = vst [vmem:[#allocation25_spill] sm:$0xff] %v2479_v52  ;;  %1925 = vmatprep.subr.bf16.mxu0 %v2479_v52  ;;  %v1021_v4 = vand.u32 4294901760, %v53_v43  ;;  %v1025_v20 = vand.u32 4294901760, %v57_v44  ;;  %v2495_v22 = vsub.f32 %v51_v33, %v117_v1  ;;  %v123_v27 = vand.u32 4294901760, %v60_v55  ;;  %v65_v52 = vld [vmem:[#allocation2 + $0x130] sm:$0xff] }
  0x27   :  { %3535 = vst [vmem:[#allocation26_spill] sm:$0xff] %v2487_v59  ;;  %2117 = vmatprep.subr.bf16.mxu1 %v2487_v59  ;;  %v127_v9 = vand.u32 4294901760, %v64_v56  ;;  %v1027_v29 = vand.u32 4294901760, %v62_v57  ;;  %v2497_v31 = vpack.c.bf16 %v121_v3, %v117_v1  ;;  %v2499_v37 = vsub.f32 %v55_v38, %v121_v3 }
  0x28   :  { %v2501_v11 = vpack.c.bf16 %v1025_v20, %v1021_v4  ;;  %v2503_v32 = vsub.f32 %v53_v43, %v1021_v4  ;;  %v2505_v59 = vsub.f32 %v57_v44, %v1025_v20  ;;  %v2509_v7 = vsub.f32 %v60_v55, %v123_v27  ;;  %v74_v55 = vld [vmem:[#allocation2 + $0x178] sm:$0xff] }
  0x29   :  { %3536 = vst [vmem:[#allocation27_spill] sm:$0xff] %v2497_v31  ;;  %3537 = vst [vmem:[#allocation28_spill] sm:$0xff] %v2499_v37  ;;  %v2507_v33 = vpack.c.bf16 %v127_v9, %v123_v27  ;;  %v2511_v5 = vsub.f32 %v64_v56, %v127_v9  ;;  %1927 = vmatpush1.bf16.msra.mxu0 %v2497_v31  ;;  %v1031_v38 = vand.u32 4294901760, %v66_v21  ;;  %v125_v43 = vand.u32 4294901760, %v59_v30  ;;  %v71_v31 = vld [vmem:[#allocation2 + $0x160] sm:$0xff] }
  0x2a   :  { %3538 = vst [vmem:[#allocation29_spill] sm:$0xff] %v2501_v11  ;;  %3539 = vst [vmem:[#allocation30_spill] sm:$0xff] %v2503_v32  ;;  %2119 = vmatpush1.bf16.msra.mxu1 %v2501_v11  ;;  %v2515_v1 = vsub.f32 %v62_v57, %v1027_v29  ;;  %v129_v3 = vand.u32 4294901760, %v63_v0  ;;  %v1029_v4 = vand.u32 4294901760, %v61_v10  ;;  %v1033_v44 = vand.u32 4294901760, %v65_v52  ;;  %v67_v57 = vld [vmem:[#allocation2 + $0x140] sm:$0xff] }
  0x2b   :  { %3540 = vst [vmem:[#allocation31_spill] sm:$0xff] %v2505_v59  ;;  %3541 = vst [vmem:[#allocation32_spill] sm:$0xff] %v2507_v33  ;;  %1929 = vmatprep.subr.bf16.mxu0 %v2507_v33  ;;  %v131_v20 = vand.u32 4294901760, %v68_v34  ;;  %v135_v61 = vand.u32 4294901760, %v72_v13  ;;  %v2518_v27 = vpack.c.bf16 %v1031_v38, %v1027_v29  ;;  %v2520_v56 = vsub.f32 %v66_v21, %v1031_v38  ;;  %v76_v29 = vld [vmem:[#allocation2 + $0x188] sm:$0xff] }
  0x2c   :  { %3542 = vst [vmem:[#allocation33_spill] sm:$0xff] %v2509_v7  ;;  %3543 = vst [vmem:[#allocation34_spill] sm:$0xff] %v2511_v5  ;;  %v2522_v9 = vpack.c.bf16 %v129_v3, %v125_v43  ;;  %v2524_v11 = vsub.f32 %v59_v30, %v125_v43  ;;  %v2526_v39 = vsub.f32 %v63_v0, %v129_v3  ;;  %v1035_v0 = vand.u32 4294901760, %v70_v48 }
  0x2d   :  { %3544 = vst [vmem:[#allocation35_spill] sm:$0xff] %v2515_v1  ;;  %3545 = vst [vmem:[#allocation36_spill] sm:$0xff] %v2518_v27  ;;  %v2528_v33 = vpack.c.bf16 %v1033_v44, %v1029_v4  ;;  %v2530_v25 = vsub.f32 %v61_v10, %v1029_v4  ;;  %v2532_v23 = vsub.f32 %v65_v52, %v1033_v44  ;;  %v80_v1 = vld [vmem:[#allocation2 + $0x1a8] sm:$0xff]  ;;  %2121 = vmatprep.subr.bf16.mxu1 %v2518_v27 }
  0x2e   :  { %3546 = vst [vmem:[#allocation37_spill] sm:$0xff] %v2520_v56  ;;  %3547 = vst [vmem:[#allocation38_spill] sm:$0xff] %v2522_v9  ;;  %1931 = vmatpush1.bf16.msra.mxu0 %v2522_v9  ;;  %v2536_v21 = vpack.c.bf16 %v135_v61, %v131_v20  ;;  %v2538_v30 = vsub.f32 %v68_v34, %v131_v20  ;;  %v2540_v38 = vsub.f32 %v72_v13, %v135_v61  ;;  %v88_v56 = vld [vmem:[#allocation2 + $0x1e8] sm:$0xff] }
  0x2f   :  { %3548 = vst [vmem:[#allocation39_spill] sm:$0xff] %v2524_v11  ;;  %3549 = vst [vmem:[#allocation40_spill] sm:$0xff] %v2526_v39  ;;  %2123 = vmatpush1.bf16.msra.mxu1 %v2528_v33  ;;  %v1039_v10 = vand.u32 4294901760, %v74_v55  ;;  %v133_v43 = vand.u32 4294901760, %v67_v57  ;;  %v137_v52 = vand.u32 4294901760, %v71_v31  ;;  %v1037_v3 = vand.u32 4294901760, %v69_v46 }
  0x30   :  { %3550 = vst [vmem:[#allocation41_spill] sm:$0xff] %v2528_v33  ;;  %3551 = vst [vmem:[#allocation42_spill] sm:$0xff] %v2530_v25  ;;  %1933 = vmatprep.subr.bf16.mxu0 %v2536_v21  ;;  %v2544_v4 = vsub.f32 %v70_v48, %v1035_v0  ;;  %v1041_v44 = vand.u32 4294901760, %v73_v16  ;;  %v139_v27 = vand.u32 4294901760, %v76_v29  ;;  %v143_v9 = vand.u32 4294901760, %v80_v1  ;;  %v82_v25 = vld [vmem:[#allocation2 + $0x1b8] sm:$0xff] }
  0x31   :  { %3552 = vst [vmem:[#allocation43_spill] sm:$0xff] %v2532_v23  ;;  %3553 = vst [vmem:[#allocation44_spill] sm:$0xff] %v2536_v21  ;;  %v78_v23 = vld [vmem:[#allocation2 + $0x198] sm:$0xff]  ;;  %v2546_v34 = vpack.c.bf16 %v1039_v10, %v1035_v0  ;;  %v2548_v61 = vsub.f32 %v74_v55, %v1039_v10  ;;  %v2550_v13 = vpack.c.bf16 %v137_v52, %v133_v43  ;;  %v75_v33 = vld [vmem:[#allocation2 + $0x180] sm:$0xff] }
  0x32   :  { %3554 = vst [vmem:[#allocation45_spill] sm:$0xff] %v2538_v30  ;;  %3555 = vst [vmem:[#allocation46_spill] sm:$0xff] %v2540_v38  ;;  %v2552_v20 = vsub.f32 %v67_v57, %v133_v43  ;;  %v79_v38 = vld [vmem:[#allocation2 + $0x1a0] sm:$0xff]  ;;  %v77_v30 = vld [vmem:[#allocation2 + $0x190] sm:$0xff]  ;;  %v2554_v39 = vsub.f32 %v71_v31, %v137_v52  ;;  %v2556_v48 = vpack.c.bf16 %v1041_v44, %v1037_v3  ;;  %v1043_v31 = vand.u32 4294901760, %v78_v23 }
  0x33   :  { %3556 = vst [vmem:[#allocation47_spill] sm:$0xff] %v2544_v4  ;;  %3557 = vst [vmem:[#allocation48_spill] sm:$0xff] %v2546_v34  ;;  %v2558_v21 = vsub.f32 %v69_v46, %v1037_v3  ;;  %v2560_v4 = vsub.f32 %v73_v16, %v1041_v44  ;;  %v81_v11 = vld [vmem:[#allocation2 + $0x1b0] sm:$0xff]  ;;  %v84_v0 = vld [vmem:[#allocation2 + $0x1c8] sm:$0xff]  ;;  %2125 = vmatprep.subr.bf16.mxu1 %v2546_v34  ;;  %1935 = vmatpush1.bf16.msra.mxu0 %v2550_v13  ;;  %v1047_v46 = vand.u32 4294901760, %v82_v25 }
  0x34   :  { %3558 = vst [vmem:[#allocation49_spill] sm:$0xff] %v2548_v61  ;;  %3559 = vst [vmem:[#allocation50_spill] sm:$0xff] %v2550_v13  ;;  %v2564_v55 = vpack.c.bf16 %v143_v9, %v139_v27  ;;  %v2566_v57 = vsub.f32 %v76_v29, %v139_v27  ;;  %v2568_v10 = vsub.f32 %v80_v1, %v143_v9  ;;  %2127 = vmatpush1.bf16.msra.mxu1 %v2556_v48 }
  0x35   :  { %3560 = vst [vmem:[#allocation51_spill] sm:$0xff] %v2552_v20  ;;  %3561 = vst [vmem:[#allocation52_spill] sm:$0xff] %v2554_v39  ;;  %v141_v43 = vand.u32 4294901760, %v75_v33  ;;  %v145_v16 = vand.u32 4294901760, %v79_v38  ;;  %v1045_v52 = vand.u32 4294901760, %v77_v30  ;;  %v2572_v3 = vsub.f32 %v78_v23, %v1043_v31  ;;  %v89_v20 = vld [vmem:[#allocation2 + $0x1f0] sm:$0xff] }
  0x36   :  { %3562 = vst [vmem:[#allocation53_spill] sm:$0xff] %v2556_v48  ;;  %3563 = vst [vmem:[#allocation54_spill] sm:$0xff] %v2558_v21  ;;  %1937 = vmatprep.subr.bf16.mxu0 %v2564_v55  ;;  %v1049_v44 = vand.u32 4294901760, %v81_v11  ;;  %v147_v34 = vand.u32 4294901760, %v84_v0  ;;  %v151_v13 = vand.u32 4294901760, %v88_v56  ;;  %v90_v21 = vld [vmem:[#allocation2 + $0x1f8] sm:$0xff]  ;;  %v2574_v27 = vpack.c.bf16 %v1047_v46, %v1043_v31 }
  0x37   :  { %3564 = vst [vmem:[#allocation55_spill] sm:$0xff] %v2560_v4  ;;  %3565 = vst [vmem:[#allocation56_spill] sm:$0xff] %v2564_v55  ;;  %v86_v4 = vld [vmem:[#allocation2 + $0x1d8] sm:$0xff]  ;;  %v2576_v1 = vsub.f32 %v82_v25, %v1047_v46  ;;  %v2578_v9 = vpack.c.bf16 %v145_v16, %v141_v43  ;;  %v2580_v29 = vsub.f32 %v75_v33, %v141_v43  ;;  %v83_v48 = vld [vmem:[#allocation2 + $0x1c0] sm:$0xff] }
  0x38   :  { %3566 = vst [vmem:[#allocation57_spill] sm:$0xff] %v2566_v57  ;;  %3567 = vst [vmem:[#allocation58_spill] sm:$0xff] %v2568_v10  ;;  %v87_v10 = vld [vmem:[#allocation2 + $0x1e0] sm:$0xff]  ;;  %v85_v57 = vld [vmem:[#allocation2 + $0x1d0] sm:$0xff]  ;;  %v2582_v39 = vsub.f32 %v79_v38, %v145_v16  ;;  %v2584_v23 = vpack.c.bf16 %v1049_v44, %v1045_v52  ;;  %v2586_v55 = vsub.f32 %v77_v30, %v1045_v52  ;;  %2129 = vmatprep.subr.bf16.mxu1 %v2574_v27 }
  0x39   :  { %3568 = vst [vmem:[#allocation59_spill] sm:$0xff] %v2572_v3  ;;  %3569 = vst [vmem:[#allocation60_spill] sm:$0xff] %v2574_v27  ;;  %v2588_v3 = vsub.f32 %v81_v11, %v1049_v44  ;;  %1939 = vmatpush1.bf16.msra.mxu0 %v2578_v9  ;;  %v2592_v25 = vpack.c.bf16 %v151_v13, %v147_v34  ;;  %v2594_v33 = vsub.f32 %v84_v0, %v147_v34 }
  0x3a   :  { %3570 = vst [vmem:[#allocation61_spill] sm:$0xff] %v2578_v9  ;;  %3571 = vst [vmem:[#allocation62_spill] sm:$0xff] %v2584_v23  ;;  %v2596_v31 = vsub.f32 %v88_v56, %v151_v13  ;;  %v1051_v46 = vand.u32 4294901760, %v86_v4  ;;  %2131 = vmatpush1.bf16.msra.mxu1 %v2584_v23  ;;  %v1055_v38 = vand.u32 4294901760, %v90_v21  ;;  %v149_v43 = vand.u32 4294901760, %v83_v48  ;;  %v25_v23 = vld [vmem:[%s3310_s1] sm:$0xff] }
  0x3b   :  { %3572 = vst [vmem:[#allocation63_spill] sm:$0xff] %v2592_v25  ;;  %v153_v30 = vand.u32 4294901760, %v87_v10  ;;  %v1053_v16 = vand.u32 4294901760, %v85_v57  ;;  %1941 = vmatprep.subr.bf16.mxu0 %v2592_v25  ;;  %v1057_v52 = vand.u32 4294901760, %v89_v20  ;;  %v3388_v9 = vand.u32 4294901760, %v2401_v18 }
  0x3c   :  { %3573 = vst [vmem:[#allocation64_spill] sm:$0xff] %v2596_v31  ;;  %v2600_v11 = vsub.f32 %v86_v4, %v1051_v46  ;;  %v2604_v34 = vpack.c.bf16 %v1055_v38, %v1051_v46  ;;  %v2606_v56 = vsub.f32 %v90_v21, %v1055_v38  ;;  %v2610_v0 = vsub.f32 %v83_v48, %v149_v43 }
  0x3d   :  { %v2608_v13 = vpack.c.bf16 %v153_v30, %v149_v43  ;;  %v2615_v25 = vsub.f32 %v87_v10, %v153_v30  ;;  %v2617_v4 = vpack.c.bf16 %v1057_v52, %v1053_v16  ;;  %v2619_v27 = vsub.f32 %v85_v57, %v1053_v16 }
  0x3e   :  { %3574 = vst [vmem:[#allocation65_spill] sm:$0xff] %v2604_v34  ;;  %3576 = vst [vmem:[#allocation67_spill] sm:$0xff] %v2610_v0  ;;  %v2621_v44 = vsub.f32 %v89_v20, %v1057_v52  ;;  %2133 = vmatprep.subr.bf16.mxu1 %v2604_v34  ;;  %v3581_v21 = vand.u32 4294901760, %v2399_v17  ;;  %v225_v46 = vsub.f32 %v2401_v18, %v3388_v9  ;;  %v3393_v10 = vand.u32 4294901760, %v2403_v19 }
  0x3f   :  { %3575 = vst [vmem:[#allocation66_spill] sm:$0xff] %v2608_v13  ;;  %3577 = vst [vmem:[#allocation68_spill] sm:$0xff] %v2615_v25  ;;  %1943 = vmatpush1.bf16.msra.mxu0 %v2608_v13  ;;  %v3398_v38 = vand.u32 4294901760, %v2407_v24  ;;  %2135 = vmatpush1.bf16.msra.mxu1 %v2617_v4  ;;  %v2634_v20 = vand.u32 4294901760, %v25_v23  ;;  %v3405_v57 = vand.u32 4294901760, %v2411_v26  ;;  %v3406_v43 = vand.u32 4294901760, %v2414_v28 }
  0x40   :  { %3578 = vst [vmem:[#allocation69_spill] sm:$0xff] %v2617_v4  ;;  %3579 = vst [vmem:[#allocation70_spill] sm:$0xff] %v2619_v27  ;;  %v213_v48 = vsub.f32 %v2399_v17, %v3581_v21  ;;  %v3410_v30 = vand.u32 4294901760, %v2420_v40  ;;  %v226_v52 = vand.u32 4294901760, %v225_v46  ;;  %v1117_v21 = vsub.f32 %v2403_v19, %v3393_v10 }
  0x41   :  { %3580 = vst [vmem:[#allocation71_spill] sm:$0xff] %v2621_v44  ;;  %3582 = vst [vmem:[#allocation72_spill] sm:$0xff] %v2634_v20  ;;  %v1129_v9 = vsub.f32 %v2407_v24, %v3398_v38  ;;  %v2646_v4 = vsub.f32 %v25_v23, %v2634_v20  ;;  %v219_v13 = vsub.f32 %v2411_v26, %v3405_v57  ;;  %v3409_v38 = vand.u32 4294901760, %v2422_v41 }
  0x42   :  { %v214_v16 = vand.u32 4294901760, %v213_v48  ;;  %v231_v48 = vsub.f32 %v2414_v28, %v3406_v43  ;;  %v1123_v46 = vsub.f32 %v2420_v40, %v3410_v30  ;;  %v1118_v34 = vand.u32 4294901760, %v1117_v21 }
  0x43   :  { %3583 = vst [vmem:[#allocation73_spill] sm:$0xff] %v2646_v4  ;;  %v1130_v19 = vand.u32 4294901760, %v1129_v9  ;;  %v2659_v23 = vand.u32 4294901760, %v2646_v4  ;;  %v220_v20 = vand.u32 4294901760, %v219_v13  ;;  %v1135_v43 = vsub.f32 %v2422_v41, %v3409_v38 }
  0x44   :  { %v1944_v10 = vpack.c.bf16 %v226_v52, %v214_v16  ;;  %v232_v24 = vand.u32 4294901760, %v231_v48  ;;  %v1124_v18 = vand.u32 4294901760, %v1123_v46  ;;  %v3412_v28 = vand.u32 4294901760, %v2424_v42 }
  0x45   :  { %3584 = vst [vmem:[#allocation74_spill] sm:$0xff] %v2659_v23  ;;  %v2136_v57 = vpack.c.bf16 %v1130_v19, %v1118_v34  ;;  %v3411_v16 = vand.u32 4294901760, %v2428_v47  ;;  %v191_v9 = vsub.f32 %v2646_v4, %v2659_v23  ;;  %v3413_v21 = vand.u32 4294901760, %v2432_v49 }
  0x46   :  { %1945 = vmatprep.subr.bf16.mxu0 %v1944_v10  ;;  %v1946_v52 = vpack.c.bf16 %v232_v24, %v220_v20  ;;  %v3416_v13 = vand.u32 4294901760, %v2435_v51  ;;  %v1136_v48 = vand.u32 4294901760, %v1135_v43  ;;  %v237_v19 = vsub.f32 %v2424_v42, %v3412_v28 }
  0x47   :  { %2137 = vmatprep.subr.bf16.mxu1 %v2136_v57  ;;  %v249_v34 = vsub.f32 %v2428_v47, %v3411_v16  ;;  %v3417_v10 = vand.u32 4294901760, %v2437_v53  ;;  %v192_v46 = vand.u32 4294901760, %v191_v9  ;;  %v1141_v24 = vsub.f32 %v2432_v49, %v3413_v21 }
  0x48   :  { %v1153_v20 = vsub.f32 %v2435_v51, %v3416_v13  ;;  %v3422_v57 = vand.u32 4294901760, %v2443_v62  ;;  %v2138_v43 = vpack.c.bf16 %v1136_v48, %v1124_v18  ;;  %v238_v38 = vand.u32 4294901760, %v237_v19 }
  0x49   :  { %v250_v30 = vand.u32 4294901760, %v249_v34  ;;  %v243_v16 = vsub.f32 %v2437_v53, %v3417_v10  ;;  %193 = vmatmul.mubr.f32.vlgmr.msra.gmra.mrb[0].mxu0 %v192_v46  ;;  %1097 = vmatmul.mubr.f32.vlgmr.msra.gmra.mrb[0].mxu1 %v192_v46  ;;  %v1142_v9 = vand.u32 4294901760, %v1141_v24  ;;  %v3418_v23 = vand.u32 4294901760, %v2445_v63 }
  0x4a   :  { %v1154_v28 = vand.u32 4294901760, %v1153_v20  ;;  %v255_v21 = vsub.f32 %v2443_v62, %v3422_v57  ;;  %1947 = vmatpush1.bf16.msra.mxu0 %v1946_v52  ;;  %2139 = vmatpush1.bf16.msra.mxu1 %v2138_v43  ;;  %v3419_v48 = vand.u32 4294901760, %v2449_v6  ;;  %v3420_v19 = vand.u32 4294901760, %v2453_v8 }
  0x4b   :  { %v1948_v13 = vpack.c.bf16 %v250_v30, %v238_v38  ;;  %v244_v18 = vand.u32 4294901760, %v243_v16  ;;  %v1147_v46 = vsub.f32 %v2445_v63, %v3418_v23  ;;  %v3421_v24 = vand.u32 4294901760, %v2456_v12 }
  0x4c   :  { %v2140_v34 = vpack.c.bf16 %v1154_v28, %v1142_v9  ;;  %v256_v10 = vand.u32 4294901760, %v255_v21  ;;  %v3585_v20 = vmov 0.0   ;;  %v1159_v38 = vsub.f32 %v2449_v6, %v3419_v48 }
  0x4d   :  { %198 = vmatprep.mubr.f32.mxu0 %v3585_v20  ;;  %1102 = vmatprep.mubr.f32.mxu1 %v3585_v20  ;;  %v261_v28 = vsub.f32 %v2453_v8, %v3420_v19  ;;  %v3423_v30 = vand.u32 4294901760, %v2460_v14  ;;  %v3434_v16 = vand.u32 4294901760, %v2462_v15  ;;  %v1148_v21 = vand.u32 4294901760, %v1147_v46 }
  0x4e   :  { %1949 = vmatprep.subr.bf16.mxu0 %v1948_v13  ;;  %2141 = vmatprep.subr.bf16.mxu1 %v2140_v34  ;;  %v1950_v52 = vpack.c.bf16 %v256_v10, %v244_v18  ;;  %v273_v43 = vsub.f32 %v2456_v12, %v3421_v24  ;;  %v3426_v13 = vand.u32 4294901760, %v2469_v35  ;;  %v1160_v9 = vand.u32 4294901760, %v1159_v38 }
  0x4f   :  { %v262_v23 = vand.u32 4294901760, %v261_v28  ;;  %v1165_v48 = vsub.f32 %v2460_v14, %v3423_v30  ;;  %v1177_v19 = vsub.f32 %v2462_v15, %v3434_v16  ;;  %v3427_v18 = vand.u32 4294901760, %v2471_v36 }
  0x50   :  { %1951 = vmatpush1.bf16.msra.mxu0 %v1950_v52  ;;  %v274_v34 = vand.u32 4294901760, %v273_v43  ;;  %v267_v10 = vsub.f32 %v2469_v35, %v3426_v13  ;;  %v3431_v46 = vand.u32 4294901760, %v2475_v45  ;;  %v2142_v38 = vpack.c.bf16 %v1160_v9, %v1148_v21 }
  0x51   :  { %v1166_v28 = vand.u32 4294901760, %v1165_v48  ;;  %v1178_v24 = vand.u32 4294901760, %v1177_v19  ;;  %v3428_v57 = vand.u32 4294901760, %v2477_v50  ;;  %v279_v52 = vsub.f32 %v2471_v36, %v3427_v18 }
  0x52   :  { %v1952_v30 = vpack.c.bf16 %v274_v34, %v262_v23  ;;  %v268_v4 = vand.u32 4294901760, %v267_v10  ;;  %v1171_v43 = vsub.f32 %v2475_v45, %v3431_v46  ;;  %2143 = vmatpush1.bf16.msra.mxu1 %v2142_v38  ;;  %v3429_v48 = vand.u32 4294901760, %v2481_v54 }
  0x53   :  { %v2144_v13 = vpack.c.bf16 %v1178_v24, %v1166_v28  ;;  %v1183_v21 = vsub.f32 %v2477_v50, %v3428_v57  ;;  %v3430_v19 = vand.u32 4294901760, %v2485_v58  ;;  %v280_v23 = vand.u32 4294901760, %v279_v52 }
  0x54   :  { %1953 = vmatprep.subr.bf16.mxu0 %v1952_v30  ;;  %v1172_v9 = vand.u32 4294901760, %v1171_v43  ;;  %v3432_v34 = vand.u32 4294901760, %v2489_v60  ;;  %v3433_v10 = vand.u32 4294901760, %v2492_v2  ;;  %v285_v24 = vsub.f32 %v2481_v54, %v3429_v48 }
  0x55   :  { %2145 = vmatprep.subr.bf16.mxu1 %v2144_v13  ;;  %v1184_v18 = vand.u32 4294901760, %v1183_v21  ;;  %v297_v38 = vsub.f32 %v2485_v58, %v3430_v19  ;;  %v3437_v28 = vand.u32 4294901760, %v2495_v22  ;;  %v1954_v57 = vpack.c.bf16 %v280_v23, %v268_v4 }
  0x56   :  { %v1189_v30 = vsub.f32 %v2489_v60, %v3432_v34  ;;  %v1201_v13 = vsub.f32 %v2492_v2, %v3433_v10  ;;  %v3436_v52 = vand.u32 4294901760, %v2499_v37  ;;  %v286_v21 = vand.u32 4294901760, %v285_v24 }
  0x57   :  { %v2146_v43 = vpack.c.bf16 %v1184_v18, %v1172_v9  ;;  %v298_v48 = vand.u32 4294901760, %v297_v38  ;;  %v291_v19 = vsub.f32 %v2495_v22, %v3437_v28  ;;  %1955 = vmatpush1.bf16.msra.mxu0 %v1954_v57  ;;  %v3435_v34 = vand.u32 4294901760, %v2503_v32 }
  0x58   :  { %v1190_v46 = vand.u32 4294901760, %v1189_v30  ;;  %v1202_v4 = vand.u32 4294901760, %v1201_v13  ;;  %v303_v23 = vsub.f32 %v2499_v37, %v3436_v52  ;;  %v3440_v18 = vand.u32 4294901760, %v2505_v59 }
  0x59   :  { %2147 = vmatpush1.bf16.msra.mxu1 %v2146_v43  ;;  %v1956_v10 = vpack.c.bf16 %v298_v48, %v286_v21  ;;  %v292_v16 = vand.u32 4294901760, %v291_v19  ;;  %v3441_v9 = vand.u32 4294901760, %v2509_v7  ;;  %v1195_v57 = vsub.f32 %v2503_v32, %v3435_v34  ;;  %v3586_v19 = vld [vmem:[#allocation35_spill] sm:$0xff]  ;;  %v3587_v21 = vld [vmem:[#allocation37_spill] sm:$0xff] }
  0x5a   :  { %v2148_v24 = vpack.c.bf16 %v1202_v4, %v1190_v46  ;;  %v304_v38 = vand.u32 4294901760, %v303_v23  ;;  %v3442_v30 = vand.u32 4294901760, %v2511_v5  ;;  %v1207_v13 = vsub.f32 %v2505_v59, %v3440_v18  ;;  %v3591_v59 = vld [vmem:[#allocation43_spill] sm:$0xff] }
  0x5b   :  { %1957 = vmatprep.subr.bf16.mxu0 %v1956_v10  ;;  %v309_v48 = vsub.f32 %v2509_v7, %v3441_v9  ;;  %v3451_v43 = vand.u32 4294901760, %v3586_v19  ;;  %v3454_v46 = vand.u32 4294901760, %v3587_v21  ;;  %v1196_v23 = vand.u32 4294901760, %v1195_v57  ;;  %v3588_v10 = vld [vmem:[#allocation39_spill] sm:$0xff] }
  0x5c   :  { %2149 = vmatprep.subr.bf16.mxu1 %v2148_v24  ;;  %v1958_v4 = vpack.c.bf16 %v304_v38, %v292_v16  ;;  %v321_v34 = vsub.f32 %v2511_v5, %v3442_v30  ;;  %v3453_v52 = vand.u32 4294901760, %v3588_v10  ;;  %v1208_v28 = vand.u32 4294901760, %v1207_v13  ;;  %v3589_v38 = vld [vmem:[#allocation40_spill] sm:$0xff]  ;;  %v3590_v30 = vld [vmem:[#allocation42_spill] sm:$0xff] }
  0x5d   :  { %v310_v32 = vand.u32 4294901760, %v309_v48  ;;  %v1213_v18 = vsub.f32 %v3586_v19, %v3451_v43  ;;  %v1225_v9 = vsub.f32 %v3587_v21, %v3454_v46  ;;  %v3456_v57 = vand.u32 4294901760, %v3589_v38 }
  0x5e   :  { %1959 = vmatpush1.bf16.msra.mxu0 %v1958_v4  ;;  %v322_v24 = vand.u32 4294901760, %v321_v34  ;;  %v315_v16 = vsub.f32 %v3588_v10, %v3453_v52  ;;  %v3459_v5 = vand.u32 4294901760, %v3590_v30  ;;  %v2150_v13 = vpack.c.bf16 %v1208_v28, %v1196_v23  ;;  %v3593_v23 = vld [vmem:[#allocation46_spill] sm:$0xff] }
  0x5f   :  { %v1214_v48 = vand.u32 4294901760, %v1213_v18  ;;  %v1226_v7 = vand.u32 4294901760, %v1225_v9  ;;  %v3458_v37 = vand.u32 4294901760, %v3591_v59  ;;  %v327_v4 = vsub.f32 %v3589_v38, %v3456_v57  ;;  %v3592_v18 = vld [vmem:[#allocation45_spill] sm:$0xff] }
  0x60   :  { %v1960_v43 = vpack.c.bf16 %v322_v24, %v310_v32  ;;  %v316_v19 = vand.u32 4294901760, %v315_v16  ;;  %v1219_v34 = vsub.f32 %v3590_v30, %v3459_v5  ;;  %2151 = vmatpush1.bf16.msra.mxu1 %v2150_v13  ;;  %v3461_v9 = vand.u32 4294901760, %v3592_v18  ;;  %v3594_v16 = vld [vmem:[#allocation47_spill] sm:$0xff] }
  0x61   :  { %v2152_v52 = vpack.c.bf16 %v1226_v7, %v1214_v48  ;;  %v1231_v28 = vsub.f32 %v3591_v59, %v3458_v37  ;;  %v3462_v46 = vand.u32 4294901760, %v3593_v23  ;;  %v328_v32 = vand.u32 4294901760, %v327_v4  ;;  %v3595_v48 = vld [vmem:[#allocation51_spill] sm:$0xff]  ;;  %v3596_v4 = vld [vmem:[#allocation52_spill] sm:$0xff] }
  0x62   :  { %1961 = vmatprep.subr.bf16.mxu0 %v1960_v43  ;;  %v1220_v24 = vand.u32 4294901760, %v1219_v34  ;;  %v3464_v10 = vand.u32 4294901760, %v3594_v16  ;;  %v3466_v57 = vand.u32 4294901760, %v2548_v61  ;;  %v333_v7 = vsub.f32 %v3592_v18, %v3461_v9  ;;  %v3598_v18 = vld [vmem:[#allocation55_spill] sm:$0xff] }
  0x63   :  { %2153 = vmatprep.subr.bf16.mxu1 %v2152_v52  ;;  %v1232_v38 = vand.u32 4294901760, %v1231_v28  ;;  %v345_v13 = vsub.f32 %v3593_v23, %v3462_v46  ;;  %v3473_v37 = vand.u32 4294901760, %v3595_v48  ;;  %v1962_v5 = vpack.c.bf16 %v328_v32, %v316_v19 }
  0x64   :  { %v1237_v43 = vsub.f32 %v3594_v16, %v3464_v10  ;;  %v1249_v52 = vsub.f32 %v2548_v61, %v3466_v57  ;;  %v3471_v34 = vand.u32 4294901760, %v3596_v4  ;;  %v334_v59 = vand.u32 4294901760, %v333_v7  ;;  %v3597_v10 = vld [vmem:[#allocation54_spill] sm:$0xff] }
  0x65   :  { %v2154_v28 = vpack.c.bf16 %v1232_v38, %v1220_v24  ;;  %v346_v9 = vand.u32 4294901760, %v345_v13  ;;  %v339_v46 = vsub.f32 %v3595_v48, %v3473_v37  ;;  %1963 = vmatpush1.bf16.msra.mxu0 %v1962_v5  ;;  %v3472_v16 = vand.u32 4294901760, %v3597_v10  ;;  %v3599_v24 = vld [vmem:[#allocation57_spill] sm:$0xff] }
  0x66   :  { %v1238_v23 = vand.u32 4294901760, %v1237_v43  ;;  %v1250_v19 = vand.u32 4294901760, %v1249_v52  ;;  %v351_v32 = vsub.f32 %v3596_v4, %v3471_v34  ;;  %v3474_v38 = vand.u32 4294901760, %v3598_v18  ;;  %v3600_v43 = vld [vmem:[#allocation58_spill] sm:$0xff] }
  0x67   :  { %2155 = vmatpush1.bf16.msra.mxu1 %v2154_v28  ;;  %v1964_v57 = vpack.c.bf16 %v346_v9, %v334_v59  ;;  %v340_v61 = vand.u32 4294901760, %v339_v46  ;;  %v3475_v7 = vand.u32 4294901760, %v3599_v24  ;;  %v1243_v5 = vsub.f32 %v3597_v10, %v3472_v16  ;;  %v3601_v46 = vld [vmem:[#allocation59_spill] sm:$0xff] }
  0x68   :  { %v2156_v13 = vpack.c.bf16 %v1250_v19, %v1238_v23  ;;  %v352_v30 = vand.u32 4294901760, %v351_v32  ;;  %v3476_v52 = vand.u32 4294901760, %v3600_v43  ;;  %v1255_v34 = vsub.f32 %v3598_v18, %v3474_v38 }
  0x69   :  { %1965 = vmatprep.subr.bf16.mxu0 %v1964_v57  ;;  %v357_v59 = vsub.f32 %v3599_v24, %v3475_v7  ;;  %v3478_v9 = vand.u32 4294901760, %v3601_v46  ;;  %v3485_v23 = vand.u32 4294901760, %v2576_v1  ;;  %v1244_v19 = vand.u32 4294901760, %v1243_v5 }
  0x6a   :  { %2157 = vmatprep.subr.bf16.mxu1 %v2156_v13  ;;  %v1966_v28 = vpack.c.bf16 %v352_v30, %v340_v61  ;;  %v369_v32 = vsub.f32 %v3600_v43, %v3476_v52  ;;  %v3480_v57 = vand.u32 4294901760, %v2580_v29  ;;  %v1256_v16 = vand.u32 4294901760, %v1255_v34 }
  0x6b   :  { %v358_v37 = vand.u32 4294901760, %v357_v59  ;;  %v1261_v38 = vsub.f32 %v3601_v46, %v3478_v9  ;;  %v1273_v7 = vsub.f32 %v2576_v1, %v3485_v23  ;;  %v3482_v30 = vand.u32 4294901760, %v2582_v39 }
  0x6c   :  { %1967 = vmatpush1.bf16.msra.mxu0 %v1966_v28  ;;  %v370_v13 = vand.u32 4294901760, %v369_v32  ;;  %v363_v61 = vsub.f32 %v2580_v29, %v3480_v57  ;;  %v3481_v5 = vand.u32 4294901760, %v2586_v55  ;;  %v2158_v34 = vpack.c.bf16 %v1256_v16, %v1244_v19  ;;  %v26_v57 = vld [vmem:[%s3310_s1 + $0x8] sm:$0xff] }
  0x6d   :  { %v1262_v59 = vand.u32 4294901760, %v1261_v38  ;;  %v1274_v52 = vand.u32 4294901760, %v1273_v7  ;;  %v3483_v43 = vand.u32 4294901760, %v2588_v3  ;;  %v375_v28 = vsub.f32 %v2582_v39, %v3482_v30 }
  0x6e   :  { %v1968_v9 = vpack.c.bf16 %v370_v13, %v358_v37  ;;  %v364_v46 = vand.u32 4294901760, %v363_v61  ;;  %v1267_v32 = vsub.f32 %v2586_v55, %v3481_v5  ;;  %2159 = vmatpush1.bf16.msra.mxu1 %v2158_v34  ;;  %v3484_v37 = vand.u32 4294901760, %v2594_v33 }
  0x6f   :  { %v2160_v16 = vpack.c.bf16 %v1274_v52, %v1262_v59  ;;  %v1279_v38 = vsub.f32 %v2588_v3, %v3483_v43  ;;  %v3486_v7 = vand.u32 4294901760, %v2596_v31  ;;  %v376_v19 = vand.u32 4294901760, %v375_v28 }
  0x70   :  { %1969 = vmatprep.subr.bf16.mxu0 %v1968_v9  ;;  %v1268_v13 = vand.u32 4294901760, %v1267_v32  ;;  %v3489_v61 = vand.u32 4294901760, %v2600_v11  ;;  %v3490_v5 = vand.u32 4294901760, %v2606_v56  ;;  %v381_v52 = vsub.f32 %v2594_v33, %v3484_v37 }
  0x71   :  { %2161 = vmatprep.subr.bf16.mxu1 %v2160_v16  ;;  %v1280_v30 = vand.u32 4294901760, %v1279_v38  ;;  %v393_v34 = vsub.f32 %v2596_v31, %v3486_v7  ;;  %v2873_v59 = vand.u32 4294901760, %v26_v57  ;;  %v1970_v43 = vpack.c.bf16 %v376_v19, %v364_v46 }
  0x72   :  { %v1285_v9 = vsub.f32 %v2600_v11, %v3489_v61  ;;  %v1297_v28 = vsub.f32 %v2606_v56, %v3490_v5  ;;  %v3492_v32 = vand.u32 4294901760, %v2610_v0  ;;  %v382_v38 = vand.u32 4294901760, %v381_v52 }
  0x73   :  { %3602 = vst [vmem:[#allocation37_spill] sm:$0xff] %v2873_v59  ;;  %v2162_v16 = vpack.c.bf16 %v1280_v30, %v1268_v13  ;;  %v394_v37 = vand.u32 4294901760, %v393_v34  ;;  %v2883_v23 = vsub.f32 %v26_v57, %v2873_v59  ;;  %1971 = vmatpush1.bf16.msra.mxu0 %v1970_v43  ;;  %v3491_v19 = vand.u32 4294901760, %v2615_v25 }
  0x74   :  { %v1286_v7 = vand.u32 4294901760, %v1285_v9  ;;  %v1298_v31 = vand.u32 4294901760, %v1297_v28  ;;  %v387_v46 = vsub.f32 %v2610_v0, %v3492_v32  ;;  %v3498_v30 = vand.u32 4294901760, %v2619_v27  ;;  %v3607_v32 = vld [vmem:[#allocation10_spill] sm:$0xff] }
  0x75   :  { %3603 = vst [vmem:[#allocation51_spill] sm:$0xff] %v2883_v23  ;;  %2163 = vmatpush1.bf16.msra.mxu1 %v2162_v16  ;;  %v1972_v61 = vpack.c.bf16 %v394_v37, %v382_v38  ;;  %v2890_v5 = vand.u32 4294901760, %v2883_v23  ;;  %v3497_v13 = vand.u32 4294901760, %v2621_v44  ;;  %v399_v43 = vsub.f32 %v2615_v25, %v3491_v19  ;;  %v3605_v38 = vld [vmem:[#allocation7_spill] sm:$0xff]  ;;  %v3606_v19 = vld [vmem:[#allocation8_spill] sm:$0xff] }
  0x76   :  { %v2164_v57 = vpack.c.bf16 %v1298_v31, %v1286_v7  ;;  %v388_v52 = vand.u32 4294901760, %v387_v46  ;;  %v1291_v37 = vsub.f32 %v2619_v27, %v3498_v30  ;;  %v1976_v46 = vpack.c.bf16 %v3605_v38, %v2399_v17 }
  0x77   :  { %3604 = vst [vmem:[#allocation52_spill] sm:$0xff] %v2890_v5  ;;  %1973 = vmatprep.subr.bf16.mxu0 %v1972_v61  ;;  %v202_v34 = vsub.f32 %v2883_v23, %v2890_v5  ;;  %v1303_v9 = vsub.f32 %v2621_v44, %v3497_v13  ;;  %v400_v28 = vand.u32 4294901760, %v399_v43  ;;  %v2168_v5 = vpack.c.bf16 %v3607_v32, %v3606_v19  ;;  %v3608_v13 = vld [vmem:[#allocation13_spill] sm:$0xff] }
  0x78   :  { %2165 = vmatprep.subr.bf16.mxu1 %v2164_v57  ;;  %v1292_v7 = vand.u32 4294901760, %v1291_v37  ;;  %v1978_v57 = vpack.c.bf16 %v3608_v13, %v2411_v26  ;;  %v2170_v43 = vpack.c.bf16 %v2422_v41, %v2420_v40  ;;  %v3609_v37 = vld [vmem:[#allocation72_spill] sm:$0xff]  ;;  %v3614_v41 = vld [vmem:[#allocation34_spill] sm:$0xff]  ;;  %v3615_v13 = vld [vmem:[#allocation35_spill] sm:$0xff]  ;;  %v3616_v26 = vand.u32 4294901760, %v2424_v42 }
  0x79   :  { %v203_v31 = vand.u32 4294901760, %v202_v34  ;;  %v1304_v16 = vand.u32 4294901760, %v1303_v9  ;;  %v1974_v61 = vpack.c.bf16 %v400_v28, %v388_v52  ;;  %v1980_v52 = vpack.c.bf16 %v2428_v47, %v2424_v42 }
  0x7a   :  { %v2172_v34 = vpack.c.bf16 %v2435_v51, %v2432_v49  ;;  %v2174_v9 = vpack.c.bf16 %v2449_v6, %v2445_v63  ;;  %v1984_v28 = vpack.c.bf16 %v2456_v12, %v2453_v8  ;;  %v3617_v32 = vand.u32 4294901760, %v2428_v47 }
  0x7b   :  { %204 = vmatmul.mubr.f32.gmra.mrb[2].mxu0 %v203_v31  ;;  %1108 = vmatmul.mubr.f32.gmra.mrb[2].mxu1 %v203_v31  ;;  %v2166_v23 = vpack.c.bf16 %v1304_v16, %v1292_v7  ;;  %v1986_v31 = vpack.c.bf16 %v2471_v36, %v2469_v35  ;;  %v2178_v7 = vpack.c.bf16 %v2477_v50, %v2475_v45  ;;  %v3618_v38 = vand.u32 4294901760, %v2432_v49 }
  0x7c   :  { %1975 = vmatpush1.bf16.msra.mxu0 %v1974_v61  ;;  %434 = vmatprep.mubr.f32.mxu0 %v3585_v20  ;;  %v1988_v16 = vpack.c.bf16 %v2485_v58, %v2481_v54  ;;  %v3610_v61 = vld [vmem:[#allocation28_spill] sm:$0xff]  ;;  %v2953_v19 = vpack.c.bf16 %v3617_v32, %v3616_v26  ;;  %v3619_v17 = vand.u32 4294901760, %v2435_v51  ;;  %v3620_v27 = vand.u32 4294901760, %v2437_v53 }
  0x7d   :  { %2167 = vmatpush1.bf16.msra.mxu1 %v2166_v23  ;;  %1977 = vmatprep.subr.bf16.mxu0 %v1976_v46  ;;  %v1982_v23 = vpack.c.bf16 %v2443_v62, %v2437_v53  ;;  %v2180_v46 = vpack.c.bf16 %v2492_v2, %v2489_v60  ;;  %v3621_v25 = vand.u32 4294901760, %v2443_v62  ;;  %v3622_v42 = vand.u32 4294901760, %v2445_v63 }
  0x7e   :  { %1338 = vmatprep.mubr.f32.mxu1 %v3585_v20  ;;  %2169 = vmatprep.subr.bf16.mxu1 %v2168_v5  ;;  %v2176_v5 = vpack.c.bf16 %v2462_v15, %v2460_v14  ;;  %v2959_v44 = vpack.c.bf16 %v3619_v17, %v3618_v38  ;;  %v3623_v47 = vand.u32 4294901760, %v2449_v6  ;;  %v3624_v49 = vand.u32 4294901760, %v2453_v8 }
  0x7f   :  { %436 = vmatmul.mubr.f32.vlgmr.msra.gmra.mrb[0].mxu0 %v3609_v37  ;;  %v2965_v0 = vpack.c.bf16 %v3621_v25, %v3620_v27  ;;  %v3625_v51 = vand.u32 4294901760, %v2456_v12  ;;  %v3626_v53 = vand.u32 4294901760, %v2460_v14  ;;  %v3627_v62 = vand.u32 4294901760, %v2462_v15 }
  0x80   :  { %1979 = vmatpush1.bf16.msra.mxu0 %v1978_v57  ;;  %1340 = vmatmul.mubr.f32.vlgmr.msra.gmra.mrb[0].mxu1 %v3609_v37  ;;  %v1990_v57 = vpack.c.bf16 %v3610_v61, %v2495_v22  ;;  %v3613_v37 = vld [vmem:[#allocation33_spill] sm:$0xff]  ;;  %v2971_v26 = vpack.c.bf16 %v3623_v47, %v3622_v42  ;;  %v3628_v63 = vand.u32 4294901760, %v2469_v35  ;;  %v3629_v6 = vand.u32 4294901760, %v2471_v36  ;;  %v3644_v47 = vld [vmem:[#allocation39_spill] sm:$0xff] }
  0x81   :  { %2171 = vmatpush1.bf16.msra.mxu1 %v2170_v43  ;;  %1981 = vmatprep.subr.bf16.mxu0 %v1980_v52  ;;  %v3611_v43 = vld [vmem:[#allocation30_spill] sm:$0xff]  ;;  %v3612_v52 = vld [vmem:[#allocation31_spill] sm:$0xff]  ;;  %v1992_v40 = vpack.c.bf16 %v3614_v41, %v3613_v37  ;;  %v2977_v17 = vpack.c.bf16 %v3625_v51, %v3624_v49  ;;  %v2983_v27 = vpack.c.bf16 %v3627_v62, %v3626_v53  ;;  %v3630_v8 = vand.u32 4294901760, %v2475_v45 }
  0x82   :  { %2173 = vmatprep.subr.bf16.mxu1 %v2172_v34  ;;  %441 = vmatprep.mubr.f32.mxu0 %v3585_v20  ;;  %v2182_v30 = vpack.c.bf16 %v3612_v52, %v3611_v43  ;;  %v2184_v34 = vpack.c.bf16 %v3587_v21, %v3615_v13  ;;  %v2990_v25 = vpack.c.bf16 %v3629_v6, %v3628_v63  ;;  %v3631_v12 = vand.u32 4294901760, %v2477_v50  ;;  %v3648_v53 = vld [vmem:[#allocation42_spill] sm:$0xff]  ;;  %v3652_v6 = vld [vmem:[#allocation45_spill] sm:$0xff] }
  0x83   :  { %1345 = vmatprep.mubr.f32.mxu1 %v3585_v20  ;;  %443 = vmatmul.mubr.f32.gmra.mrb[2].mxu0 %v2873_v59  ;;  %v3632_v14 = vand.u32 4294901760, %v2481_v54  ;;  %v3633_v15 = vand.u32 4294901760, %v2485_v58  ;;  %v3634_v35 = vand.u32 4294901760, %v2489_v60  ;;  %v3635_v36 = vand.u32 4294901760, %v2492_v2 }
  0x84   :  { %1983 = vmatpush1.bf16.msra.mxu0 %v1982_v23  ;;  %1347 = vmatmul.mubr.f32.gmra.mrb[2].mxu1 %v2873_v59  ;;  %v2996_v32 = vpack.c.bf16 %v3631_v12, %v3630_v8  ;;  %v3636_v45 = vand.u32 4294901760, %v2495_v22  ;;  %v3637_v50 = vand.u32 4294901760, %v3610_v61  ;;  %v3638_v54 = vand.u32 4294901760, %v3611_v43  ;;  %v3646_v43 = vld [vmem:[#allocation40_spill] sm:$0xff]  ;;  %v3654_v8 = vld [vmem:[#allocation46_spill] sm:$0xff] }
  0x85   :  { %2175 = vmatpush1.bf16.msra.mxu1 %v2174_v9  ;;  %1985 = vmatprep.subr.bf16.mxu0 %v1984_v28  ;;  %v3002_v38 = vpack.c.bf16 %v3633_v15, %v3632_v14  ;;  %v3009_v23 = vpack.c.bf16 %v3635_v36, %v3634_v35  ;;  %v3639_v58 = vand.u32 4294901760, %v3612_v52  ;;  %v3641_v60 = vand.u32 4294901760, %v3614_v41  ;;  %v3658_v15 = vld [vmem:[#allocation49_spill] sm:$0xff]  ;;  %v3686_v59 = vld [vmem:[#allocation68_spill] sm:$0xff] }
  0x86   :  { %2177 = vmatprep.subr.bf16.mxu1 %v2176_v5  ;;  %577 = vmatprep.mubr.f32.mxu0 %v3585_v20  ;;  %v3015_v9 = vpack.c.bf16 %v3637_v50, %v3636_v45  ;;  %v3640_v5 = vand.u32 4294901760, %v3613_v37  ;;  %v3642_v2 = vand.u32 4294901760, %v3615_v13  ;;  %v3643_v22 = vand.u32 4294901760, %v3587_v21  ;;  %v3650_v37 = vld [vmem:[#allocation43_spill] sm:$0xff] }
  0x87   :  { %1481 = vmatprep.mubr.f32.mxu1 %v3585_v20  ;;  %v3021_v28 = vpack.c.bf16 %v3639_v58, %v3638_v54  ;;  %v3645_v49 = vand.u32 4294901760, %v3644_v47  ;;  %v3647_v51 = vand.u32 4294901760, %v3646_v43  ;;  %v3649_v62 = vand.u32 4294901760, %v3648_v53  ;;  %v3656_v21 = vld [vmem:[#allocation47_spill] sm:$0xff] }
  0x88   :  { %v3027_v42 = vpack.c.bf16 %v3641_v60, %v3640_v5  ;;  %1987 = vmatpush1.bf16.msra.mxu0 %v1986_v31  ;;  %v3033_v61 = vpack.c.bf16 %v3643_v22, %v3642_v2  ;;  %v3651_v63 = vand.u32 4294901760, %v3650_v37  ;;  %v3653_v31 = vand.u32 4294901760, %v3652_v6 }
  0x89   :  { %v3039_v52 = vpack.c.bf16 %v3647_v51, %v3645_v49  ;;  %v3655_v13 = vand.u32 4294901760, %v3654_v8  ;;  %2179 = vmatpush1.bf16.msra.mxu1 %v2178_v7  ;;  %1989 = vmatprep.subr.bf16.mxu0 %v1988_v16  ;;  %v3657_v14 = vand.u32 4294901760, %v3656_v21  ;;  %v3659_v35 = vand.u32 4294901760, %v3658_v15  ;;  %v3666_v16 = vld [vmem:[#allocation58_spill] sm:$0xff]  ;;  %v3669_v49 = vld [vmem:[#allocation59_spill] sm:$0xff] }
  0x8a   :  { %v3045_v41 = vpack.c.bf16 %v3651_v63, %v3649_v62  ;;  %v3660_v45 = vand.u32 4294901760, %v3595_v48  ;;  %v3661_v50 = vand.u32 4294901760, %v3596_v4  ;;  %v3662_v58 = vand.u32 4294901760, %v3597_v10  ;;  %2181 = vmatprep.subr.bf16.mxu1 %v2180_v46 }
  0x8b   :  { %v3051_v12 = vpack.c.bf16 %v3655_v13, %v3653_v31  ;;  %v3057_v36 = vpack.c.bf16 %v3659_v35, %v3657_v14  ;;  %v3663_v5 = vand.u32 4294901760, %v3598_v18  ;;  %v3665_v7 = vand.u32 4294901760, %v3599_v24 }
  0x8c   :  { %v3063_v54 = vpack.c.bf16 %v3661_v50, %v3660_v45  ;;  %v3667_v2 = vand.u32 4294901760, %v3666_v16  ;;  %v3670_v51 = vand.u32 4294901760, %v3669_v49  ;;  %v3671_v62 = vand.u32 4294901760, %v2576_v1  ;;  %1991 = vmatpush1.bf16.msra.mxu0 %v1990_v57 }
  0x8d   :  { %v3069_v60 = vpack.c.bf16 %v3663_v5, %v3662_v58  ;;  %v3673_v31 = vand.u32 4294901760, %v2580_v29  ;;  %v3674_v13 = vand.u32 4294901760, %v2582_v39  ;;  %v3676_v46 = vand.u32 4294901760, %v2586_v55  ;;  %v3680_v58 = vld [vmem:[#allocation64_spill] sm:$0xff]  ;;  %2183 = vmatpush1.bf16.msra.mxu1 %v2182_v30  ;;  %1993 = vmatprep.subr.bf16.mxu0 %v1992_v40 }
  0x8e   :  { %v3075_v22 = vpack.c.bf16 %v3667_v2, %v3665_v7  ;;  %v3081_v63 = vpack.c.bf16 %v3671_v62, %v3670_v51  ;;  %v3677_v35 = vand.u32 4294901760, %v2588_v3  ;;  %v3679_v50 = vand.u32 4294901760, %v2594_v33  ;;  %2185 = vmatprep.subr.bf16.mxu1 %v2184_v34 }
  0x8f   :  { %3664 = vst [vmem:[#allocation54_spill] sm:$0xff] %v3069_v60  ;;  %v3087_v14 = vpack.c.bf16 %v3674_v13, %v3673_v31  ;;  %v3681_v5 = vand.u32 4294901760, %v3680_v58  ;;  %v3682_v2 = vand.u32 4294901760, %v2600_v11  ;;  %v3683_v51 = vand.u32 4294901760, %v2606_v56  ;;  %v3684_v31 = vld [vmem:[#allocation67_spill] sm:$0xff] }
  0x90   :  { %3668 = vst [vmem:[#allocation55_spill] sm:$0xff] %v3075_v22  ;;  %3672 = vst [vmem:[#allocation57_spill] sm:$0xff] %v3081_v63  ;;  %v3093_v45 = vpack.c.bf16 %v3677_v35, %v3676_v46  ;;  %v3685_v13 = vand.u32 4294901760, %v3684_v31  ;;  %v3688_v46 = vld [vmem:[#allocation70_spill] sm:$0xff]  ;;  %v2190_v30 = vpack.c.bf16 %v3598_v18, %v3597_v10  ;;  %v2000_v40 = vpack.c.bf16 %v3666_v16, %v3599_v24  ;;  %v3699_v24 = vld [vmem:[#allocation51_spill] sm:$0xff] }
  0x91   :  { %3675 = vst [vmem:[#allocation28_spill] sm:$0xff] %v3087_v14  ;;  %v3099_v7 = vpack.c.bf16 %v3681_v5, %v3679_v50  ;;  %v3105_v62 = vpack.c.bf16 %v3683_v51, %v3682_v2  ;;  %v3687_v14 = vand.u32 4294901760, %v3686_v59  ;;  %v3689_v35 = vand.u32 4294901760, %v3688_v46  ;;  %v3698_v18 = vld [vmem:[#allocation18_spill] sm:$0xff]  ;;  %v3709_v16 = vld [vmem:[#allocation29_spill] sm:$0xff] }
  0x92   :  { %3678 = vst [vmem:[#allocation30_spill] sm:$0xff] %v3093_v45  ;;  %v3690_v45 = vld [vmem:[#allocation71_spill] sm:$0xff]  ;;  %v1994_v50 = vpack.c.bf16 %v3646_v43, %v3644_v47  ;;  %v2186_v5 = vpack.c.bf16 %v3650_v37, %v3648_v53  ;;  %v1996_v2 = vpack.c.bf16 %v3654_v8, %v3652_v6  ;;  %v2192_v57 = vpack.c.bf16 %v2576_v1, %v3669_v49  ;;  %v3701_v47 = vld [vmem:[#allocation20_spill] sm:$0xff]  ;;  %v3702_v43 = vld [vmem:[#allocation21_spill] sm:$0xff] }
  0x93   :  { %v3111_v63 = vpack.c.bf16 %v3687_v14, %v3685_v13  ;;  %v3691_v22 = vand.u32 4294901760, %v3690_v45  ;;  %v2188_v14 = vpack.c.bf16 %v3658_v15, %v3656_v21  ;;  %v2002_v34 = vpack.c.bf16 %v2582_v39, %v2580_v29  ;;  %v3694_v29 = vld [vmem:[#allocation73_spill] sm:$0xff]  ;;  %v3703_v53 = vld [vmem:[#allocation22_spill] sm:$0xff]  ;;  %v3704_v37 = vld [vmem:[#allocation23_spill] sm:$0xff] }
  0x94   :  { %1995 = vmatpush1.bf16.msra.mxu0 %v1994_v50  ;;  %2187 = vmatpush1.bf16.msra.mxu1 %v2186_v5  ;;  %v2196_v10 = vpack.c.bf16 %v2606_v56, %v2600_v11  ;;  %v2006_v1 = vpack.c.bf16 %v3686_v59, %v3684_v31  ;;  %v2198_v39 = vpack.c.bf16 %v3690_v45, %v3688_v46  ;;  %v3696_v11 = vld [vmem:[#allocation14_spill] sm:$0xff]  ;;  %v3697_v56 = vld [vmem:[#allocation17_spill] sm:$0xff]  ;;  %v3700_v59 = vld [vmem:[#allocation19_spill] sm:$0xff] }
  0x95   :  { %v3117_v60 = vpack.c.bf16 %v3691_v22, %v3689_v35  ;;  %v1998_v22 = vpack.c.bf16 %v3596_v4, %v3595_v48  ;;  %1997 = vmatprep.subr.bf16.mxu0 %v1996_v2  ;;  %2189 = vmatprep.subr.bf16.mxu1 %v2188_v14  ;;  %v2194_v48 = vpack.c.bf16 %v2588_v3, %v2586_v55  ;;  %v3692_v55 = vld [vmem:[#allocation5_spill] sm:$0xff]  ;;  %v3705_v6 = vld [vmem:[#allocation24_spill] sm:$0xff]  ;;  %v3707_v21 = vld [vmem:[#allocation26_spill] sm:$0xff] }
  0x96   :  { %v2004_v4 = vpack.c.bf16 %v3680_v58, %v2594_v33  ;;  %v3693_v3 = vld [vmem:[#allocation9_spill] sm:$0xff]  ;;  %v3695_v33 = vld [vmem:[#allocation11_spill] sm:$0xff]  ;;  %v3710_v49 = vld [vmem:[#allocation32_spill] sm:$0xff] }
  0x97   :  { %v3706_v8 = vld [vmem:[#allocation25_spill] sm:$0xff]  ;;  %v3708_v15 = vld [vmem:[#allocation27_spill] sm:$0xff]  ;;  %v3711_v45 = vld [vmem:[#allocation36_spill] sm:$0xff] }
  0x98   :  { %1999 = vmatpush1.bf16.msra.mxu0 %v1998_v22  ;;  %2191 = vmatpush1.bf16.msra.mxu1 %v2190_v30  ;;  %v3712_v58 = vld [vmem:[#allocation38_spill] sm:$0xff]  ;;  %v3713_v51 = vld [vmem:[#allocation41_spill] sm:$0xff]  ;;  %v3714_v31 = vld [vmem:[#allocation44_spill] sm:$0xff] }
  0x99   :  { %2001 = vmatprep.subr.bf16.mxu0 %v2000_v40  ;;  %2193 = vmatprep.subr.bf16.mxu1 %v2192_v57  ;;  %v3715_v13 = vld [vmem:[#allocation48_spill] sm:$0xff]  ;;  %v3716_v46 = vld [vmem:[#allocation50_spill] sm:$0xff]  ;;  %v3717_v35 = vld [vmem:[#allocation53_spill] sm:$0xff] }
  0x9a   :  { %v3718_v50 = vld [vmem:[#allocation56_spill] sm:$0xff]  ;;  %v3720_v2 = vld [vmem:[#allocation61_spill] sm:$0xff]  ;;  %v3721_v14 = vld [vmem:[#allocation62_spill] sm:$0xff] }
  0x9b   :  { %v3719_v5 = vld [vmem:[#allocation60_spill] sm:$0xff]  ;;  %v3722_v22 = vld [vmem:[#allocation63_spill] sm:$0xff]  ;;  %v3723_v30 = vld [vmem:[#allocation6_spill] sm:$0xff] }
  0x9c   :  { %2003 = vmatpush1.bf16.msra.mxu0 %v2002_v34  ;;  %2195 = vmatpush1.bf16.msra.mxu1 %v2194_v48  ;;  %v3724_v40 = vand.u32 4294901760, %v3723_v30  ;;  %v3725_v57 = vld [vmem:[#allocation7_spill] sm:$0xff] }
  0x9d   :  { %2005 = vmatprep.subr.bf16.mxu0 %v2004_v4  ;;  %2197 = vmatprep.subr.bf16.mxu1 %v2196_v10  ;;  %v3726_v34 = vand.u32 4294901760, %v3725_v57  ;;  %v3727_v4 = vld [vmem:[#allocation65_spill] sm:$0xff]  ;;  %v3728_v10 = vld [vmem:[#allocation8_spill] sm:$0xff]  ;;  %v3738_v30 = vld [vmem:[#allocation15_spill] sm:$0xff] }
  0x9e   :  { %v3739_v57 = vand.u32 4294901760, %v3738_v30 }
  0x9f   :  { %v2040_v48 = vpack.c.bf16 %v3726_v34, %v3724_v40  ;;  %v3740_v40 = vld [vmem:[#allocation16_spill] sm:$0xff] }
  0xa0   :  { %2007 = vmatpush1.bf16.msra.mxu0 %v2006_v1  ;;  %2199 = vmatpush1.bf16.msra.mxu1 %v2198_v39  ;;  %v3729_v1 = vand.u32 4294901760, %v3728_v10  ;;  %v3730_v39 = vld [vmem:[#allocation10_spill] sm:$0xff]  ;;  %v3741_v34 = vand.u32 4294901760, %v3740_v40 }
  0xa1   :  { %2009 = vmatprep.subr.bf16.mxu0 %v3692_v55  ;;  %2201 = vmatprep.subr.bf16.mxu1 %v3693_v3  ;;  %v3742_v10 = vld [vmem:[#allocation74_spill] sm:$0xff] }
  0xa3   :  { %580 = vmatmul.mubr.f32.vlgmr.msra.gmra.mrb[0].mxu0 %v3694_v29  ;;  %1484 = vmatmul.mubr.f32.vlgmr.msra.gmra.mrb[0].mxu1 %v3694_v29  ;;  %v3731_v29 = vand.u32 4294901760, %v3730_v39 }
  0xa4   :  { %2011 = vmatpush1.bf16.msra.mxu0 %v3695_v33  ;;  %2203 = vmatpush1.bf16.msra.mxu1 %v3696_v11 }
  0xa5   :  { %2013 = vmatprep.subr.bf16.mxu0 %v3697_v56  ;;  %2205 = vmatprep.subr.bf16.mxu1 %v3698_v18 }
  0xa6   :  { %585 = vmatprep.mubr.f32.mxu0 %v3585_v20  ;;  %1489 = vmatprep.mubr.f32.mxu1 %v3585_v20 }
  0xa7   :  { %588 = vmatmul.mubr.f32.gmra.mrb[2].mxu0 %v3699_v24  ;;  %1492 = vmatmul.mubr.f32.gmra.mrb[2].mxu1 %v3699_v24  ;;  %v2232_v24 = vpack.c.bf16 %v3731_v29, %v3729_v1 }
  0xa8   :  { %2015 = vmatpush1.bf16.msra.mxu0 %v3700_v59  ;;  %2207 = vmatpush1.bf16.msra.mxu1 %v3701_v47 }
  0xa9   :  { %2017 = vmatprep.subr.bf16.mxu0 %v3702_v43  ;;  %2209 = vmatprep.subr.bf16.mxu1 %v3703_v53 }
  0xaa   :  { %690 = vmatprep.mubr.f32.mxu0 %v3585_v20  ;;  %1594 = vmatprep.mubr.f32.mxu1 %v3585_v20 }
  0xac   :  { %2019 = vmatpush1.bf16.msra.mxu0 %v3704_v37  ;;  %2211 = vmatpush1.bf16.msra.mxu1 %v3705_v6 }
  0xad   :  { %2021 = vmatprep.subr.bf16.mxu0 %v3706_v8  ;;  %2213 = vmatprep.subr.bf16.mxu1 %v3707_v21 }
  0xb0   :  { %2023 = vmatpush1.bf16.msra.mxu0 %v3708_v15  ;;  %2215 = vmatpush1.bf16.msra.mxu1 %v3709_v16 }
  0xb1   :  { %2025 = vmatprep.subr.bf16.mxu0 %v3710_v49  ;;  %2217 = vmatprep.subr.bf16.mxu1 %v3711_v45 }
  0xb4   :  { %2027 = vmatpush1.bf16.msra.mxu0 %v3712_v58  ;;  %2219 = vmatpush1.bf16.msra.mxu1 %v3713_v51 }
  0xb5   :  { %2029 = vmatprep.subr.bf16.mxu0 %v3714_v31  ;;  %2221 = vmatprep.subr.bf16.mxu1 %v3715_v13 }
  0xb8   :  { %2031 = vmatpush1.bf16.msra.mxu0 %v3716_v46  ;;  %2223 = vmatpush1.bf16.msra.mxu1 %v3717_v35  ;;  %v3735_v35 = vld [vmem:[#allocation13_spill] sm:$0xff] }
  0xb9   :  { %2033 = vmatprep.subr.bf16.mxu0 %v3718_v50  ;;  %2225 = vmatprep.subr.bf16.mxu1 %v3719_v5  ;;  %v3732_v50 = vld [vmem:[#allocation66_spill] sm:$0xff]  ;;  %v3733_v5 = vld [vmem:[#allocation12_spill] sm:$0xff] }
  0xbc   :  { %2035 = vmatpush1.bf16.msra.mxu0 %v3720_v2  ;;  %2227 = vmatpush1.bf16.msra.mxu1 %v3721_v14  ;;  %v3734_v2 = vand.u32 4294901760, %v3733_v5  ;;  %v3736_v14 = vand.u32 4294901760, %v3735_v35  ;;  %v3743_v35 = vld [vmem:[#allocation52_spill] sm:$0xff] }
  0xbd   :  { %2037 = vmatprep.subr.bf16.mxu0 %v3722_v22  ;;  %2229 = vmatprep.subr.bf16.mxu1 %v3727_v4  ;;  %v3737_v22 = vld [vmem:[#allocation69_spill] sm:$0xff]  ;;  %v2234_v4 = vpack.c.bf16 %v3741_v34, %v3739_v57 }
  0xbe   :  { %v2042_v46 = vpack.c.bf16 %v3736_v14, %v3734_v2 }
  0xc0   :  { %2039 = vmatpush1.bf16.msra.mxu0 %v3732_v50  ;;  %2231 = vmatpush1.bf16.msra.mxu1 %v3737_v22 }
  0xc1   :  { %2041 = vmatprep.subr.bf16.mxu0 %v2040_v48  ;;  %2233 = vmatprep.subr.bf16.mxu1 %v2232_v24 }
  0xc3   :  { %694 = vmatmul.mubr.f32.vlgmr.msra.gmra.mrb[0].mxu0 %v3742_v10  ;;  %1598 = vmatmul.mubr.f32.vlgmr.msra.gmra.mrb[0].mxu1 %v3742_v10 }
  0xc4   :  { %2043 = vmatpush1.bf16.msra.mxu0 %v2042_v46  ;;  %2235 = vmatpush1.bf16.msra.mxu1 %v2234_v4 }
  0xc5   :  { %2045 = vmatprep.subr.bf16.mxu0 %v2953_v19  ;;  %2237 = vmatprep.subr.bf16.mxu1 %v2959_v44  ;;  %v3744_v44 = vld [vmem:[#allocation54_spill] sm:$0xff]  ;;  %v3746_v19 = vld [vmem:[#allocation57_spill] sm:$0xff] }
  0xc6   :  { %699 = vmatprep.mubr.f32.mxu0 %v3585_v20  ;;  %1603 = vmatprep.mubr.f32.mxu1 %v3585_v20 }
  0xc7   :  { %703 = vmatmul.mubr.f32.gmra.mrb[2].mxu0 %v3743_v35  ;;  %1607 = vmatmul.mubr.f32.gmra.mrb[2].mxu1 %v3743_v35 }
  0xc8   :  { %2047 = vmatpush1.bf16.msra.mxu0 %v2965_v0  ;;  %2239 = vmatpush1.bf16.msra.mxu1 %v2971_v26  ;;  %v3745_v0 = vld [vmem:[#allocation55_spill] sm:$0xff]  ;;  %v3747_v26 = vld [vmem:[#allocation28_spill] sm:$0xff] }
  0xc9   :  { %2049 = vmatprep.subr.bf16.mxu0 %v2977_v17  ;;  %2241 = vmatprep.subr.bf16.mxu1 %v2983_v27  ;;  %v3748_v17 = vld [vmem:[#allocation30_spill] sm:$0xff]  ;;  %v3749_v27 = vld [vmem:[#allocation72_spill] sm:$0xff] }
  0xca   :  { %869 = vmatprep.mubr.f32.mxu0 %v3585_v20  ;;  %1773 = vmatprep.mubr.f32.mxu1 %v3585_v20 }
  0xcc   :  { %2051 = vmatpush1.bf16.msra.mxu0 %v2990_v25  ;;  %2243 = vmatpush1.bf16.msra.mxu1 %v2996_v32  ;;  %v3750_v25 = vld [vmem:[#allocation37_spill] sm:$0xff]  ;;  %v3751_v32 = vld [vmem:[#allocation50_spill] sm:$0xff] }
  0xcd   :  { %2053 = vmatprep.subr.bf16.mxu0 %v3002_v38  ;;  %2245 = vmatprep.subr.bf16.mxu1 %v3009_v23  ;;  %v3752_v38 = vld [vmem:[#allocation53_spill] sm:$0xff]  ;;  %v3753_v23 = vld [vmem:[#allocation56_spill] sm:$0xff] }
  0xd0   :  { %2055 = vmatpush1.bf16.msra.mxu0 %v3015_v9  ;;  %2247 = vmatpush1.bf16.msra.mxu1 %v3021_v28  ;;  %v3754_v9 = vld [vmem:[#allocation60_spill] sm:$0xff]  ;;  %v3755_v28 = vld [vmem:[#allocation61_spill] sm:$0xff] }
  0xd1   :  { %2057 = vmatprep.subr.bf16.mxu0 %v3027_v42  ;;  %2249 = vmatprep.subr.bf16.mxu1 %v3033_v61  ;;  %v3756_v42 = vld [vmem:[#allocation62_spill] sm:$0xff]  ;;  %v3757_v61 = vld [vmem:[#allocation63_spill] sm:$0xff] }
  0xd4   :  { %2059 = vmatpush1.bf16.msra.mxu0 %v3039_v52  ;;  %2251 = vmatpush1.bf16.msra.mxu1 %v3045_v41  ;;  %v3758_v52 = vld [vmem:[#allocation65_spill] sm:$0xff] }
  0xd5   :  { %2061 = vmatprep.subr.bf16.mxu0 %v3051_v12  ;;  %2253 = vmatprep.subr.bf16.mxu1 %v3057_v36 }
  0xd8   :  { %2063 = vmatpush1.bf16.msra.mxu0 %v3063_v54  ;;  %2255 = vmatpush1.bf16.msra.mxu1 %v3744_v44 }
  0xd9   :  { %2065 = vmatprep.subr.bf16.mxu0 %v3745_v0  ;;  %2257 = vmatprep.subr.bf16.mxu1 %v3746_v19 }
  0xdc   :  { %2067 = vmatpush1.bf16.msra.mxu0 %v3747_v26  ;;  %2259 = vmatpush1.bf16.msra.mxu1 %v3748_v17 }
  0xdd   :  { %2069 = vmatprep.subr.bf16.mxu0 %v3099_v7  ;;  %2261 = vmatprep.subr.bf16.mxu1 %v3105_v62 }
  0xe0   :  { %2071 = vmatpush1.bf16.msra.mxu0 %v3111_v63  ;;  %2263 = vmatpush1.bf16.msra.mxu1 %v3117_v60 }
  0xe1   :  { %2073 = vmatprep.subr.bf16.mxu0 %v3692_v55  ;;  %2265 = vmatprep.subr.bf16.mxu1 %v3693_v3 }
  0xe3   :  { %871 = vmatmul.mubr.f32.vlgmr.msra.gmra.mrb[0].mxu0 %v3749_v27  ;;  %1775 = vmatmul.mubr.f32.vlgmr.msra.gmra.mrb[0].mxu1 %v3749_v27 }
  0xe4   :  { %2075 = vmatpush1.bf16.msra.mxu0 %v3695_v33  ;;  %2267 = vmatpush1.bf16.msra.mxu1 %v3696_v11 }
  0xe5   :  { %2077 = vmatprep.subr.bf16.mxu0 %v3697_v56  ;;  %2269 = vmatprep.subr.bf16.mxu1 %v3698_v18 }
  0xe6   :  { %876 = vmatprep.mubr.f32.mxu0 %v3585_v20  ;;  %1780 = vmatprep.mubr.f32.mxu1 %v3585_v20 }
  0xe7   :  { %878 = vmatmul.mubr.f32.gmra.mrb[2].mxu0 %v3750_v25  ;;  %1782 = vmatmul.mubr.f32.gmra.mrb[2].mxu1 %v3750_v25 }
  0xe8   :  { %2079 = vmatpush1.bf16.msra.mxu0 %v3700_v59  ;;  %2271 = vmatpush1.bf16.msra.mxu1 %v3701_v47 }
  0xe9   :  { %2081 = vmatprep.subr.bf16.mxu0 %v3702_v43  ;;  %2273 = vmatprep.subr.bf16.mxu1 %v3703_v53 }
  0xea   :  { %980 = vmatprep.mubr.f32.mxu0 %v3585_v20  ;;  %1884 = vmatprep.mubr.f32.mxu1 %v3585_v20 }
  0xec   :  { %2083 = vmatpush1.bf16.msra.mxu0 %v3704_v37  ;;  %2275 = vmatpush1.bf16.msra.mxu1 %v3705_v6 }
  0xed   :  { %2085 = vmatprep.subr.bf16.mxu0 %v3706_v8  ;;  %2277 = vmatprep.subr.bf16.mxu1 %v3707_v21 }
  0xf0   :  { %2087 = vmatpush1.bf16.msra.mxu0 %v3708_v15  ;;  %2279 = vmatpush1.bf16.msra.mxu1 %v3709_v16 }
  0xf1   :  { %2089 = vmatprep.subr.bf16.mxu0 %v3710_v49  ;;  %2281 = vmatprep.subr.bf16.mxu1 %v3711_v45 }
  0xf4   :  { %2091 = vmatpush1.bf16.msra.mxu0 %v3712_v58  ;;  %2283 = vmatpush1.bf16.msra.mxu1 %v3713_v51 }
  0xf5   :  { %2093 = vmatprep.subr.bf16.mxu0 %v3714_v31  ;;  %2285 = vmatprep.subr.bf16.mxu1 %v3715_v13 }
  0xf8   :  { %2095 = vmatpush1.bf16.msra.mxu0 %v3751_v32  ;;  %2287 = vmatpush1.bf16.msra.mxu1 %v3752_v38 }
  0xf9   :  { %2097 = vmatprep.subr.bf16.mxu0 %v3753_v23  ;;  %2289 = vmatprep.subr.bf16.mxu1 %v3754_v9 }
  0xfc   :  { %2099 = vmatpush1.bf16.msra.mxu0 %v3755_v28  ;;  %2291 = vmatpush1.bf16.msra.mxu1 %v3756_v42 }
  0xfd   :  { %2101 = vmatprep.subr.bf16.mxu0 %v3757_v61  ;;  %2293 = vmatprep.subr.bf16.mxu1 %v3758_v52 }
 0x100   :  { %2103 = vmatpush1.bf16.msra.mxu0 %v3732_v50  ;;  %2295 = vmatpush1.bf16.msra.mxu1 %v3737_v22 }
 0x103   :  { %982 = vmatmul.mubr.f32.vlgmr.msra.gmra.mrb[0].mxu0 %v3749_v27  ;;  %1886 = vmatmul.mubr.f32.vlgmr.msra.gmra.mrb[0].mxu1 %v3749_v27 }
 0x104   :  { %987 = vmatprep.mubr.f32.mxu0 %v3585_v20  ;;  %1891 = vmatprep.mubr.f32.mxu1 %v3585_v20 }
 0x107   :  { %989 = vmatmul.mubr.f32.gmra.mrb[2].mxu0 %v3750_v25  ;;  %1893 = vmatmul.mubr.f32.gmra.mrb[2].mxu1 %v3750_v25 }
 0x1d6   :  { %v983_v41 = vpop.f32.mrb[0].mxu0  ;;  %v1887_v12 = vpop.f32.mrb[0].mxu1 }
 0x1d7   :  { %1899 = vst [vmem:[%s3311_s2] sm:$0xff] %v983_v41  ;;  %v985_v36 = vpop.f32.mrb[1].mxu0  ;;  %1901 = vst [vmem:[%s3311_s2 + $0x10] sm:$0xff] %v1887_v12  ;;  %v1889_v20 = vpop.f32.mrb[1].mxu1 }
 0x1d8   :  { %1900 = vst [vmem:[%s3311_s2 + $0x8] sm:$0xff] %v985_v36  ;;  %1902 = vst [vmem:[%s3311_s2 + $0x18] sm:$0xff] %v1889_v20 }
 0x1da   :  { %v990_v54 = vpop.f32.mrb[2].mxu0  ;;  %v1894_v60 = vpop.f32.mrb[2].mxu1 }
 0x1db   :  { %1903 = vst [vmem:[%s3311_s2 + $0x20] sm:$0xff] %v990_v54  ;;  %v992_v63 = vpop.f32.mrb[3].mxu0  ;;  %1905 = vst [vmem:[%s3311_s2 + $0x30] sm:$0xff] %v1894_v60  ;;  %v1896_v7 = vpop.f32.mrb[3].mxu1 }
 0x1dc   :  { %1904 = vst [vmem:[%s3311_s2 + $0x28] sm:$0xff] %v992_v63  ;;  %1906 = vst [vmem:[%s3311_s2 + $0x38] sm:$0xff] %v1896_v7 }
 0x1dd   :  { %1911 = vsyncpa [#allocation3], 1 }

</bundles_post_ra>
